<compile_context>
chip_gen: v5e
topology: v5e:2x2
jax: 0.10.0
libtpu: 0.0.40
codegen_flags: <defaults>
</compile_context>

<pallas_src>
import functools

import jax
import jax.numpy as jnp
from jax.experimental import pallas as pl
from jax.experimental.pallas import tpu as pltpu

# ----------------------------- config ---------------------------------------
VOCAB = 100
TYPE_VOCAB = 2
MAX_POS = 16
H = 32              # embedding_dim (small stand-in for BERT's 768)
N_HEADS = 4
HEAD_DIM = H // N_HEADS
FFN = 64
N_LAYERS = 2
NUM_CLASSES_A = 5   # task_a_num_classes
HEAD_PAD = 128      # lane-dense padded width of the fused task-head output

# MXU operand dtype. f32 at toy dims (launch-bound, tight numerics); set to jnp.bfloat16
# at real BERT dims: bf16 operands + f32 accumulation is the native MXU fast path on
# v5e/v6e/v7x and halves weight DMA / VMEM bytes (relieves v7x's 64 MiB budget).
MXU_DTYPE = jnp.float32

# rows of the per-layer (L, 6, H) bias/LN slab (sublane-row indexed, lane-aligned)
R_BO, R_LN1G, R_LN1B, R_B2, R_LN2G, R_LN2B = range(6)


# --------------------------- kernel helpers ---------------------------------
def _ln(x, g, b, eps=1e-12):
    # eps=1e-12 matches HuggingFace bert-base-uncased LayerNorm.
    mu = jnp.mean(x, axis=-1, keepdims=True)
    var = jnp.mean(jnp.square(x - mu), axis=-1, keepdims=True)
    return (x - mu) * jax.lax.rsqrt(var + eps) * g + b


def _m(x):
    """Cast an MXU operand to the configured matmul dtype (accumulation stays f32)."""
    return x.astype(MXU_DTYPE)


# ----------------------------- fused kernel ----------------------------------
def fused_encoder_kernel(B, S,
                         x_ref, key_bias_ref, pool_ref, emb_ln_ref,
                         wqkv_ref, wo_ref, w1_ref, w2_ref,
                         bqkv_ref, b1_ref, vec_ref, wh_ref, bh_ref,
                         out_ref):
    """Embedding LN + N_LAYERS transformer layers + masked mean pooling + task heads.

    x_ref:        (B*S, H) f32 token embeddings (already summed tok+pos+type)
    key_bias_ref: (B, 1, S)  (1-mask) * -1e9, broadcast over the query axis
    pool_ref:     (B, 1, S)  pre-normalized masked-mean weights
    emb_ln_ref:   (2, H)     rows [gamma, beta] of the embedding LayerNorm
    wqkv_ref:     (L, H, 3H)   packed Q|K|V projection per layer
    wo_ref:       (L, H, H)    attention output projection per layer
    w1_ref:       (L, H, FFN)  FFN up-projection per layer
    w2_ref:       (L, FFN, H)  FFN down-projection per layer
    bqkv_ref:     (L, 1, 3H)   QKV bias per layer
    b1_ref:       (L, 1, FFN)  FFN up bias per layer
    vec_ref:      (L, 6, H)    rows [b_o, ln1_g, ln1_b, b_ffn2, ln2_g, ln2_b]
    wh_ref/bh_ref:(H, 128)/(1, 128)  fused, zero-padded task heads
    out_ref:      (B, 128)     lane-dense fused head logits
    """
    BS = B * S
    x = x_ref[...]                                              # (BS, H)
    emb_ln = emb_ln_ref[...]
    x = _ln(x, emb_ln[0:1, :], emb_ln[1:2, :])

    key_bias = key_bias_ref[...]                                # (B, 1, S)
    scale = 1.0 / (HEAD_DIM ** 0.5)

    # TODO(synk): at real BERT depth (L=12, H=768), move layers onto an 'arbitrary' grid
    # axis with layer-indexed BlockSpecs so only ~2 layers of weights are double-buffered
    # in VMEM (mandatory on v7x's 64 MiB budget) instead of this static unroll.
    for l in range(N_LAYERS):
        # ---- multi-head self-attention: one packed QKV matmul for the whole batch
        qkv = (jnp.dot(_m(x), _m(wqkv_ref[l]), preferred_element_type=jnp.float32)
               + bqkv_ref[l])                                   # (BS, 3H)

        ctx_heads = []
        for h in range(N_HEADS):          # static; single-batch-dim einsums per head
            lo = h * HEAD_DIM
            qh = qkv[:, lo:lo + HEAD_DIM].reshape(B, S, HEAD_DIM)
            kh = qkv[:, H + lo:H + lo + HEAD_DIM].reshape(B, S, HEAD_DIM)
            vh = qkv[:, 2 * H + lo:2 * H + lo + HEAD_DIM].reshape(B, S, HEAD_DIM)
            s = jnp.einsum('bqd,bkd->bqk', _m(qh), _m(kh),
                           preferred_element_type=jnp.float32)  # (B, S, S)
            s = s * scale + key_bias
            s = s - jnp.max(s, axis=-1, keepdims=True)
            p = jnp.exp(s)
            p = p * pl.reciprocal(jnp.sum(p, axis=-1, keepdims=True), approx=True)
            ctxh = jnp.einsum('bqk,bkd->bqd', _m(p), _m(vh),
                              preferred_element_type=jnp.float32)
            ctx_heads.append(ctxh.reshape(BS, HEAD_DIM))
        ctx = jnp.concatenate(ctx_heads, axis=-1)               # (BS, H), register-resident

        vec = vec_ref[l]                                        # (6, H)
        attn = (jnp.dot(_m(ctx), _m(wo_ref[l]), preferred_element_type=jnp.float32)
                + vec[R_BO:R_BO + 1, :])
        x = _ln(x + attn, vec[R_LN1G:R_LN1G + 1, :], vec[R_LN1B:R_LN1B + 1, :])

        # ---- FFN
        h1 = (jnp.dot(_m(x), _m(w1_ref[l]), preferred_element_type=jnp.float32)
              + b1_ref[l])
        # TODO(synk): torch.nn.GELU defaults to exact erf; tanh-approx GELU is used here
        # because lax.erf has no guaranteed Mosaic lowering (max rel. diff ~1e-3).
        h1 = jax.nn.gelu(h1)
        ffn = (jnp.dot(_m(h1), _m(w2_ref[l]), preferred_element_type=jnp.float32)
               + vec[R_B2:R_B2 + 1, :])
        x = _ln(x + ffn, vec[R_LN2G:R_LN2G + 1, :], vec[R_LN2B:R_LN2B + 1, :])

    # ---- masked mean pooling (normalization folded into pool_ref) + fused task heads
    pooled = jnp.einsum('bqs,bsh->bqh', pool_ref[...], x.reshape(B, S, H),
                        preferred_element_type=jnp.float32).reshape(B, H)
    out_ref[...] = (jnp.dot(_m(pooled), _m(wh_ref[...]),
                            preferred_element_type=jnp.float32) + bh_ref[...])


# ------------------------ pallas_call wrapper --------------------------------
def _full_spec(arr):
    n = arr.ndim
    return pl.BlockSpec(arr.shape, lambda i, _n=n: (0,) * _n)


def encoder_heads_call(x2d, key_bias, pool_mask, emb_ln,
                       w_qkv, w_o, w_ffn1, w_ffn2, b_qkv, b_ffn1, vec,
                       wh, bh, B, S):
    kernel = functools.partial(fused_encoder_kernel, B, S)
    inputs = (x2d, key_bias, pool_mask, emb_ln,
              w_qkv, w_o, w_ffn1, w_ffn2, b_qkv, b_ffn1, vec, wh, bh)
    # TODO(synk): for large B on v7x (2 TensorCores), tile the grid over batch with
    # dimension_semantics=("parallel",) instead of this 1-point grid.
    return pl.pallas_call(
        kernel,
        out_shape=jax.ShapeDtypeStruct((B, HEAD_PAD), jnp.float32),
        grid=(1,),
        in_specs=[_full_spec(a) for a in inputs],
        out_specs=pl.BlockSpec((B, HEAD_PAD), lambda i: (0, 0)),
        compiler_params=pltpu.CompilerParams(dimension_semantics=("arbitrary",)),
    )(*inputs)


# ----------------------------- parameters ------------------------------------
def init_params(key):
    keys = iter(jax.random.split(key, 32))

    def w(shape, scale=0.02):
        return jax.random.normal(next(keys), shape, jnp.float32) * scale

    wqkv_l, wo_l, w1_l, w2_l, bqkv_l, b1_l, vec_l = [], [], [], [], [], [], []
    for _ in range(N_LAYERS):
        wqkv_l.append(w((H, 3 * H)))
        wo_l.append(w((H, H)))
        w1_l.append(w((H, FFN)))
        w2_l.append(w((FFN, H)))
        bqkv_l.append(jnp.zeros((1, 3 * H), jnp.float32))
        b1_l.append(jnp.zeros((1, FFN), jnp.float32))
        v = jnp.zeros((6, H), jnp.float32)
        v = v.at[R_LN1G].set(1.0).at[R_LN2G].set(1.0)
        vec_l.append(v)

    # task heads (Dropout(0.1) is identity at eval), fused + zero-padded to 128 lanes
    wa = w((H, NUM_CLASSES_A))
    wb = w((H, 1))
    w_head = jnp.zeros((H, HEAD_PAD), jnp.float32)
    w_head = w_head.at[:, 0:NUM_CLASSES_A].set(wa)
    w_head = w_head.at[:, NUM_CLASSES_A:NUM_CLASSES_A + 1].set(wb)
    b_head = jnp.zeros((1, HEAD_PAD), jnp.float32)

    emb_ln = jnp.stack([jnp.ones((H,), jnp.float32),
                        jnp.zeros((H,), jnp.float32)])           # (2, H)

    return {
        'tok_emb': w((VOCAB, H)),
        'pos_emb': w((MAX_POS, H)),
        'type_emb': w((TYPE_VOCAB, H)),
        'emb_ln': emb_ln,              # (2, H) rows: [gamma, beta]
        'w_qkv': jnp.stack(wqkv_l),    # (L, H, 3H)
        'w_o': jnp.stack(wo_l),        # (L, H, H)
        'w_ffn1': jnp.stack(w1_l),     # (L, H, FFN)
        'w_ffn2': jnp.stack(w2_l),     # (L, FFN, H)
        'b_qkv': jnp.stack(bqkv_l),    # (L, 1, 3H)
        'b_ffn1': jnp.stack(b1_l),     # (L, 1, FFN)
        'vec': jnp.stack(vec_l),       # (L, 6, H) rows: [b_o, ln1_g, ln1_b, b_ffn2, ln2_g, ln2_b]
        'w_head': w_head,              # (H, 128): cols [0:5]=task_a, [5:6]=task_b
        'b_head': b_head,              # (1, 128)
    }


# ------------------------------ forward --------------------------------------
def multitask_forward(params, input_ids, attention_mask=None, token_type_ids=None,
                      task=None):
    """Mirrors MultiTaskModel.forward: returns {'task_a': [B,5], 'task_b': [B,1]}."""
    # TODO(synk): inference-only (Dropout is identity); no training/bwd pass by design.
    B, S = input_ids.shape
    if attention_mask is None:
        attention_mask = jnp.ones((B, S), jnp.float32)
    if token_type_ids is None:
        token_type_ids = jnp.zeros((B, S), jnp.int32)

    mask_f = attention_mask.astype(jnp.float32)                       # (B, S)
    key_bias = ((1.0 - mask_f) * (-1e9)).reshape(B, 1, S)
    denom = jnp.maximum(jnp.sum(mask_f, axis=-1, keepdims=True), 1e-9)
    pool_mask = (mask_f / denom).reshape(B, 1, S)   # pre-normalized masked-mean weights

    # Embedding gathers are glue (data-dependent gather; kept in plain JAX).
    pos = jnp.arange(S, dtype=jnp.int32)
    emb = (params['tok_emb'][input_ids]
           + params['pos_emb'][pos][None, :, :]
           + params['type_emb'][token_type_ids])                      # (B, S, H)
    x2d = emb.reshape(B * S, H).astype(jnp.float32)

    logits = encoder_heads_call(x2d, key_bias, pool_mask, params['emb_ln'],
                                params['w_qkv'], params['w_o'], params['w_ffn1'],
                                params['w_ffn2'], params['b_qkv'], params['b_ffn1'],
                                params['vec'], params['w_head'], params['b_head'], B, S)

    outputs = {}
    if task is None or task == 'task_a':
        outputs['task_a'] = logits[:, 0:NUM_CLASSES_A]                  # (B, 5)
    if task is None or task == 'task_b':
        outputs['task_b'] = logits[:, NUM_CLASSES_A:NUM_CLASSES_A + 1]  # (B, 1)
    return outputs


# ------------------------------- main -----------------------------------------
if __name__ == "__main__":
    key = jax.random.PRNGKey(0)
    pkey, dkey = jax.random.split(key)
    params = init_params(pkey)

    B, S = 2, 8
    input_ids = jax.random.randint(dkey, (B, S), 0, VOCAB, dtype=jnp.int32)
    attention_mask = jnp.array([[1, 1, 1, 1, 1, 1, 0, 0],
                                [1, 1, 1, 1, 1, 1, 1, 1]], dtype=jnp.float32)
    token_type_ids = jnp.zeros((B, S), jnp.int32)

    outputs = multitask_forward(params, input_ids, attention_mask, token_type_ids,
                                task=None)
    outputs = jax.block_until_ready(outputs)

    assert outputs['task_a'].shape == (B, NUM_CLASSES_A)
    assert outputs['task_b'].shape == (B, 1)
    assert bool(jnp.all(jnp.isfinite(outputs['task_a'])))
    assert bool(jnp.all(jnp.isfinite(outputs['task_b'])))
    print("KERNEL_OK")
</pallas_src>

<mosaic_0001>
module attributes {stable_mosaic.version = 11 : i64} {
  func.func @fused_encoder_kernel(%arg0: i32, %arg1: memref<16x32xf32, #tpu.memory_space<vmem>>, %arg2: memref<2x1x8xf32, #tpu.memory_space<vmem>>, %arg3: memref<2x1x8xf32, #tpu.memory_space<vmem>>, %arg4: memref<2x32xf32, #tpu.memory_space<vmem>>, %arg5: memref<2x32x96xf32, #tpu.memory_space<vmem>>, %arg6: memref<2x32x32xf32, #tpu.memory_space<vmem>>, %arg7: memref<2x32x64xf32, #tpu.memory_space<vmem>>, %arg8: memref<2x64x32xf32, #tpu.memory_space<vmem>>, %arg9: memref<2x1x96xf32, #tpu.memory_space<vmem>>, %arg10: memref<2x1x64xf32, #tpu.memory_space<vmem>>, %arg11: memref<2x6x32xf32, #tpu.memory_space<vmem>>, %arg12: memref<32x128xf32, #tpu.memory_space<vmem>>, %arg13: memref<1x128xf32, #tpu.memory_space<vmem>>, %arg14: memref<2x128xf32, #tpu.memory_space<vmem>>) attributes {dimension_semantics = [#tpu.dimension_semantics<arbitrary>], iteration_bounds = array<i64: 1>, scalar_prefetch = 0 : i64, scratch_operands = 0 : i64, tpu.core_type = #tpu.core_type<tc>, window_params = [{pipeline_mode = #tpu.pipeline_mode<synchronous>, transform_indices = @transform_0, window_bounds = array<i64: 16, 32>}, {pipeline_mode = #tpu.pipeline_mode<synchronous>, transform_indices = @transform_1, window_bounds = array<i64: 2, 1, 8>}, {pipeline_mode = #tpu.pipeline_mode<synchronous>, transform_indices = @transform_2, window_bounds = array<i64: 2, 1, 8>}, {pipeline_mode = #tpu.pipeline_mode<synchronous>, transform_indices = @transform_3, window_bounds = array<i64: 2, 32>}, {pipeline_mode = #tpu.pipeline_mode<synchronous>, transform_indices = @transform_4, window_bounds = array<i64: 2, 32, 96>}, {pipeline_mode = #tpu.pipeline_mode<synchronous>, transform_indices = @transform_5, window_bounds = array<i64: 2, 32, 32>}, {pipeline_mode = #tpu.pipeline_mode<synchronous>, transform_indices = @transform_6, window_bounds = array<i64: 2, 32, 64>}, {pipeline_mode = #tpu.pipeline_mode<synchronous>, transform_indices = @transform_7, window_bounds = array<i64: 2, 64, 32>}, {pipeline_mode = #tpu.pipeline_mode<synchronous>, transform_indices = @transform_8, window_bounds = array<i64: 2, 1, 96>}, {pipeline_mode = #tpu.pipeline_mode<synchronous>, transform_indices = @transform_9, window_bounds = array<i64: 2, 1, 64>}, {pipeline_mode = #tpu.pipeline_mode<synchronous>, transform_indices = @transform_10, window_bounds = array<i64: 2, 6, 32>}, {pipeline_mode = #tpu.pipeline_mode<synchronous>, transform_indices = @transform_11, window_bounds = array<i64: 32, 128>}, {pipeline_mode = #tpu.pipeline_mode<synchronous>, transform_indices = @transform_12, window_bounds = array<i64: 1, 128>}, {pipeline_mode = #tpu.pipeline_mode<synchronous>, transform_indices = @transform_13, window_bounds = array<i64: 2, 128>}]} {
    %c0 = arith.constant 0 : index
    %c0_0 = arith.constant 0 : index
    %0 = vector.load %arg1[%c0, %c0_0] : memref<16x32xf32, #tpu.memory_space<vmem>>, vector<16x32xf32>
    %c0_1 = arith.constant 0 : index
    %c0_2 = arith.constant 0 : index
    %1 = vector.load %arg4[%c0_1, %c0_2] : memref<2x32xf32, #tpu.memory_space<vmem>>, vector<2x32xf32>
    %2 = vector.extract_strided_slice %1 {offsets = [0, 0], sizes = [1, 32], strides = [1, 1]} : vector<2x32xf32> to vector<1x32xf32>
    %3 = vector.extract_strided_slice %1 {offsets = [1, 0], sizes = [1, 32], strides = [1, 1]} : vector<2x32xf32> to vector<1x32xf32>
    %cst = arith.constant dense<0.000000e+00> : vector<16xf32>
    %4 = vector.multi_reduction <add>, %0, %cst [1] : vector<16x32xf32> to vector<16xf32>
    %5 = vector.shape_cast %4 : vector<16xf32> to vector<16x1xf32>
    %cst_3 = arith.constant 3.200000e+01 : f32
    %6 = vector.broadcast %cst_3 : f32 to vector<16x1xf32>
    %7 = arith.divf %5, %6 : vector<16x1xf32>
    %8 = vector.broadcast %7 : vector<16x1xf32> to vector<16x32xf32>
    %9 = arith.subf %0, %8 : vector<16x32xf32>
    %10 = arith.mulf %9, %9 : vector<16x32xf32>
    %cst_4 = arith.constant dense<0.000000e+00> : vector<16xf32>
    %11 = vector.multi_reduction <add>, %10, %cst_4 [1] : vector<16x32xf32> to vector<16xf32>
    %12 = vector.shape_cast %11 : vector<16xf32> to vector<16x1xf32>
    %cst_5 = arith.constant 3.200000e+01 : f32
    %13 = vector.broadcast %cst_5 : f32 to vector<16x1xf32>
    %14 = arith.divf %12, %13 : vector<16x1xf32>
    %15 = vector.broadcast %7 : vector<16x1xf32> to vector<16x32xf32>
    %16 = arith.subf %0, %15 : vector<16x32xf32>
    %cst_6 = arith.constant 9.99999996E-13 : f32
    %17 = vector.broadcast %cst_6 : f32 to vector<16x1xf32>
    %18 = arith.addf %14, %17 : vector<16x1xf32>
    %19 = math.rsqrt %18 : vector<16x1xf32>
    %20 = vector.broadcast %19 : vector<16x1xf32> to vector<16x32xf32>
    %21 = arith.mulf %16, %20 : vector<16x32xf32>
    %22 = vector.broadcast %2 : vector<1x32xf32> to vector<16x32xf32>
    %23 = arith.mulf %21, %22 : vector<16x32xf32>
    %24 = vector.broadcast %3 : vector<1x32xf32> to vector<16x32xf32>
    %25 = arith.addf %23, %24 : vector<16x32xf32>
    %c0_7 = arith.constant 0 : index
    %c0_8 = arith.constant 0 : index
    %c0_9 = arith.constant 0 : index
    %26 = vector.load %arg2[%c0_7, %c0_8, %c0_9] : memref<2x1x8xf32, #tpu.memory_space<vmem>>, vector<2x1x8xf32>
    %c0_10 = arith.constant 0 : index
    %c0_11 = arith.constant 0 : index
    %c0_12 = arith.constant 0 : index
    %27 = vector.load %arg5[%c0_10, %c0_11, %c0_12] : memref<2x32x96xf32, #tpu.memory_space<vmem>>, vector<1x32x96xf32>
    %28 = vector.shape_cast %27 : vector<1x32x96xf32> to vector<32x96xf32>
    %cst_13 = arith.constant dense<0.000000e+00> : vector<16x96xf32>
    %29 = tpu.matmul %25, %28, %cst_13 {dimension_numbers = #tpu.dot_dimension_numbers<[1], [0], [0], [1], [0, 0, 1, 1], [], []>} : vector<16x32xf32>, vector<32x96xf32>, vector<16x96xf32> -> vector<16x96xf32>
    %c0_14 = arith.constant 0 : index
    %c0_15 = arith.constant 0 : index
    %c0_16 = arith.constant 0 : index
    %30 = vector.load %arg9[%c0_14, %c0_15, %c0_16] : memref<2x1x96xf32, #tpu.memory_space<vmem>>, vector<1x1x96xf32>
    %31 = vector.shape_cast %30 : vector<1x1x96xf32> to vector<1x96xf32>
    %32 = vector.broadcast %31 : vector<1x96xf32> to vector<16x96xf32>
    %33 = arith.addf %29, %32 : vector<16x96xf32>
    %34 = vector.extract_strided_slice %33 {offsets = [0, 0], sizes = [16, 8], strides = [1, 1]} : vector<16x96xf32> to vector<16x8xf32>
    %35 = vector.shape_cast %34 : vector<16x8xf32> to vector<2x8x8xf32>
    %36 = vector.extract_strided_slice %33 {offsets = [0, 32], sizes = [16, 8], strides = [1, 1]} : vector<16x96xf32> to vector<16x8xf32>
    %37 = vector.shape_cast %36 : vector<16x8xf32> to vector<2x8x8xf32>
    %38 = vector.extract_strided_slice %33 {offsets = [0, 64], sizes = [16, 8], strides = [1, 1]} : vector<16x96xf32> to vector<16x8xf32>
    %39 = vector.shape_cast %38 : vector<16x8xf32> to vector<2x8x8xf32>
    "tpu.trace_start"() <{level = 10 : i32, message = "bqd,bkd->bqk"}> : () -> ()
    %cst_17 = arith.constant dense<0.000000e+00> : vector<2x8x8xf32>
    %40 = tpu.matmul %35, %37, %cst_17 {dimension_numbers = #tpu.dot_dimension_numbers<[2], [2], [1], [1], [0, 0, 0, 1, 1, 1], [0], [0]>} : vector<2x8x8xf32>, vector<2x8x8xf32>, vector<2x8x8xf32> -> vector<2x8x8xf32>
    "tpu.trace_stop"() : () -> ()
    %cst_18 = arith.constant 0.353553385 : f32
    %41 = vector.broadcast %cst_18 : f32 to vector<2x8x8xf32>
    %42 = arith.mulf %40, %41 : vector<2x8x8xf32>
    %43 = vector.broadcast %26 : vector<2x1x8xf32> to vector<2x8x8xf32>
    %44 = arith.addf %42, %43 : vector<2x8x8xf32>
    %cst_19 = arith.constant dense<0xFF800000> : vector<2x8xf32>
    %45 = vector.multi_reduction <maximumf>, %44, %cst_19 [2] : vector<2x8x8xf32> to vector<2x8xf32>
    %46 = vector.shape_cast %45 : vector<2x8xf32> to vector<2x8x1xf32>
    %47 = vector.broadcast %46 : vector<2x8x1xf32> to vector<2x8x8xf32>
    %48 = arith.subf %44, %47 : vector<2x8x8xf32>
    %49 = math.exp %48 : vector<2x8x8xf32>
    %cst_20 = arith.constant dense<0.000000e+00> : vector<2x8xf32>
    %50 = vector.multi_reduction <add>, %49, %cst_20 [2] : vector<2x8x8xf32> to vector<2x8xf32>
    %51 = vector.shape_cast %50 : vector<2x8xf32> to vector<2x8x1xf32>
    %52 = tpu.reciprocal %51 {approx = true} : vector<2x8x1xf32> -> vector<2x8x1xf32>
    %53 = vector.broadcast %52 : vector<2x8x1xf32> to vector<2x8x8xf32>
    %54 = arith.mulf %49, %53 : vector<2x8x8xf32>
    "tpu.trace_start"() <{level = 10 : i32, message = "bqk,bkd->bqd"}> : () -> ()
    %cst_21 = arith.constant dense<0.000000e+00> : vector<2x8x8xf32>
    %55 = tpu.matmul %54, %39, %cst_21 {dimension_numbers = #tpu.dot_dimension_numbers<[2], [1], [1], [2], [0, 0, 0, 1, 1, 2], [0], [0]>} : vector<2x8x8xf32>, vector<2x8x8xf32>, vector<2x8x8xf32> -> vector<2x8x8xf32>
    "tpu.trace_stop"() : () -> ()
    %56 = vector.shape_cast %55 : vector<2x8x8xf32> to vector<16x8xf32>
    %57 = vector.extract_strided_slice %33 {offsets = [0, 8], sizes = [16, 8], strides = [1, 1]} : vector<16x96xf32> to vector<16x8xf32>
    %58 = vector.shape_cast %57 : vector<16x8xf32> to vector<2x8x8xf32>
    %59 = vector.extract_strided_slice %33 {offsets = [0, 40], sizes = [16, 8], strides = [1, 1]} : vector<16x96xf32> to vector<16x8xf32>
    %60 = vector.shape_cast %59 : vector<16x8xf32> to vector<2x8x8xf32>
    %61 = vector.extract_strided_slice %33 {offsets = [0, 72], sizes = [16, 8], strides = [1, 1]} : vector<16x96xf32> to vector<16x8xf32>
    %62 = vector.shape_cast %61 : vector<16x8xf32> to vector<2x8x8xf32>
    "tpu.trace_start"() <{level = 10 : i32, message = "bqd,bkd->bqk"}> : () -> ()
    %cst_22 = arith.constant dense<0.000000e+00> : vector<2x8x8xf32>
    %63 = tpu.matmul %58, %60, %cst_22 {dimension_numbers = #tpu.dot_dimension_numbers<[2], [2], [1], [1], [0, 0, 0, 1, 1, 1], [0], [0]>} : vector<2x8x8xf32>, vector<2x8x8xf32>, vector<2x8x8xf32> -> vector<2x8x8xf32>
    "tpu.trace_stop"() : () -> ()
    %cst_23 = arith.constant 0.353553385 : f32
    %64 = vector.broadcast %cst_23 : f32 to vector<2x8x8xf32>
    %65 = arith.mulf %63, %64 : vector<2x8x8xf32>
    %66 = vector.broadcast %26 : vector<2x1x8xf32> to vector<2x8x8xf32>
    %67 = arith.addf %65, %66 : vector<2x8x8xf32>
    %cst_24 = arith.constant dense<0xFF800000> : vector<2x8xf32>
    %68 = vector.multi_reduction <maximumf>, %67, %cst_24 [2] : vector<2x8x8xf32> to vector<2x8xf32>
    %69 = vector.shape_cast %68 : vector<2x8xf32> to vector<2x8x1xf32>
    %70 = vector.broadcast %69 : vector<2x8x1xf32> to vector<2x8x8xf32>
    %71 = arith.subf %67, %70 : vector<2x8x8xf32>
    %72 = math.exp %71 : vector<2x8x8xf32>
    %cst_25 = arith.constant dense<0.000000e+00> : vector<2x8xf32>
    %73 = vector.multi_reduction <add>, %72, %cst_25 [2] : vector<2x8x8xf32> to vector<2x8xf32>
    %74 = vector.shape_cast %73 : vector<2x8xf32> to vector<2x8x1xf32>
    %75 = tpu.reciprocal %74 {approx = true} : vector<2x8x1xf32> -> vector<2x8x1xf32>
    %76 = vector.broadcast %75 : vector<2x8x1xf32> to vector<2x8x8xf32>
    %77 = arith.mulf %72, %76 : vector<2x8x8xf32>
    "tpu.trace_start"() <{level = 10 : i32, message = "bqk,bkd->bqd"}> : () -> ()
    %cst_26 = arith.constant dense<0.000000e+00> : vector<2x8x8xf32>
    %78 = tpu.matmul %77, %62, %cst_26 {dimension_numbers = #tpu.dot_dimension_numbers<[2], [1], [1], [2], [0, 0, 0, 1, 1, 2], [0], [0]>} : vector<2x8x8xf32>, vector<2x8x8xf32>, vector<2x8x8xf32> -> vector<2x8x8xf32>
    "tpu.trace_stop"() : () -> ()
    %79 = vector.shape_cast %78 : vector<2x8x8xf32> to vector<16x8xf32>
    %80 = vector.extract_strided_slice %33 {offsets = [0, 16], sizes = [16, 8], strides = [1, 1]} : vector<16x96xf32> to vector<16x8xf32>
    %81 = vector.shape_cast %80 : vector<16x8xf32> to vector<2x8x8xf32>
    %82 = vector.extract_strided_slice %33 {offsets = [0, 48], sizes = [16, 8], strides = [1, 1]} : vector<16x96xf32> to vector<16x8xf32>
    %83 = vector.shape_cast %82 : vector<16x8xf32> to vector<2x8x8xf32>
    %84 = vector.extract_strided_slice %33 {offsets = [0, 80], sizes = [16, 8], strides = [1, 1]} : vector<16x96xf32> to vector<16x8xf32>
    %85 = vector.shape_cast %84 : vector<16x8xf32> to vector<2x8x8xf32>
    "tpu.trace_start"() <{level = 10 : i32, message = "bqd,bkd->bqk"}> : () -> ()
    %cst_27 = arith.constant dense<0.000000e+00> : vector<2x8x8xf32>
    %86 = tpu.matmul %81, %83, %cst_27 {dimension_numbers = #tpu.dot_dimension_numbers<[2], [2], [1], [1], [0, 0, 0, 1, 1, 1], [0], [0]>} : vector<2x8x8xf32>, vector<2x8x8xf32>, vector<2x8x8xf32> -> vector<2x8x8xf32>
    "tpu.trace_stop"() : () -> ()
    %cst_28 = arith.constant 0.353553385 : f32
    %87 = vector.broadcast %cst_28 : f32 to vector<2x8x8xf32>
    %88 = arith.mulf %86, %87 : vector<2x8x8xf32>
    %89 = vector.broadcast %26 : vector<2x1x8xf32> to vector<2x8x8xf32>
    %90 = arith.addf %88, %89 : vector<2x8x8xf32>
    %cst_29 = arith.constant dense<0xFF800000> : vector<2x8xf32>
    %91 = vector.multi_reduction <maximumf>, %90, %cst_29 [2] : vector<2x8x8xf32> to vector<2x8xf32>
    %92 = vector.shape_cast %91 : vector<2x8xf32> to vector<2x8x1xf32>
    %93 = vector.broadcast %92 : vector<2x8x1xf32> to vector<2x8x8xf32>
    %94 = arith.subf %90, %93 : vector<2x8x8xf32>
    %95 = math.exp %94 : vector<2x8x8xf32>
    %cst_30 = arith.constant dense<0.000000e+00> : vector<2x8xf32>
    %96 = vector.multi_reduction <add>, %95, %cst_30 [2] : vector<2x8x8xf32> to vector<2x8xf32>
    %97 = vector.shape_cast %96 : vector<2x8xf32> to vector<2x8x1xf32>
    %98 = tpu.reciprocal %97 {approx = true} : vector<2x8x1xf32> -> vector<2x8x1xf32>
    %99 = vector.broadcast %98 : vector<2x8x1xf32> to vector<2x8x8xf32>
    %100 = arith.mulf %95, %99 : vector<2x8x8xf32>
    "tpu.trace_start"() <{level = 10 : i32, message = "bqk,bkd->bqd"}> : () -> ()
    %cst_31 = arith.constant dense<0.000000e+00> : vector<2x8x8xf32>
    %101 = tpu.matmul %100, %85, %cst_31 {dimension_numbers = #tpu.dot_dimension_numbers<[2], [1], [1], [2], [0, 0, 0, 1, 1, 2], [0], [0]>} : vector<2x8x8xf32>, vector<2x8x8xf32>, vector<2x8x8xf32> -> vector<2x8x8xf32>
    "tpu.trace_stop"() : () -> ()
    %102 = vector.shape_cast %101 : vector<2x8x8xf32> to vector<16x8xf32>
    %103 = vector.extract_strided_slice %33 {offsets = [0, 24], sizes = [16, 8], strides = [1, 1]} : vector<16x96xf32> to vector<16x8xf32>
    %104 = vector.shape_cast %103 : vector<16x8xf32> to vector<2x8x8xf32>
    %105 = vector.extract_strided_slice %33 {offsets = [0, 56], sizes = [16, 8], strides = [1, 1]} : vector<16x96xf32> to vector<16x8xf32>
    %106 = vector.shape_cast %105 : vector<16x8xf32> to vector<2x8x8xf32>
    %107 = vector.extract_strided_slice %33 {offsets = [0, 88], sizes = [16, 8], strides = [1, 1]} : vector<16x96xf32> to vector<16x8xf32>
    %108 = vector.shape_cast %107 : vector<16x8xf32> to vector<2x8x8xf32>
    "tpu.trace_start"() <{level = 10 : i32, message = "bqd,bkd->bqk"}> : () -> ()
    %cst_32 = arith.constant dense<0.000000e+00> : vector<2x8x8xf32>
    %109 = tpu.matmul %104, %106, %cst_32 {dimension_numbers = #tpu.dot_dimension_numbers<[2], [2], [1], [1], [0, 0, 0, 1, 1, 1], [0], [0]>} : vector<2x8x8xf32>, vector<2x8x8xf32>, vector<2x8x8xf32> -> vector<2x8x8xf32>
    "tpu.trace_stop"() : () -> ()
    %cst_33 = arith.constant 0.353553385 : f32
    %110 = vector.broadcast %cst_33 : f32 to vector<2x8x8xf32>
    %111 = arith.mulf %109, %110 : vector<2x8x8xf32>
    %112 = vector.broadcast %26 : vector<2x1x8xf32> to vector<2x8x8xf32>
    %113 = arith.addf %111, %112 : vector<2x8x8xf32>
    %cst_34 = arith.constant dense<0xFF800000> : vector<2x8xf32>
    %114 = vector.multi_reduction <maximumf>, %113, %cst_34 [2] : vector<2x8x8xf32> to vector<2x8xf32>
    %115 = vector.shape_cast %114 : vector<2x8xf32> to vector<2x8x1xf32>
    %116 = vector.broadcast %115 : vector<2x8x1xf32> to vector<2x8x8xf32>
    %117 = arith.subf %113, %116 : vector<2x8x8xf32>
    %118 = math.exp %117 : vector<2x8x8xf32>
    %cst_35 = arith.constant dense<0.000000e+00> : vector<2x8xf32>
    %119 = vector.multi_reduction <add>, %118, %cst_35 [2] : vector<2x8x8xf32> to vector<2x8xf32>
    %120 = vector.shape_cast %119 : vector<2x8xf32> to vector<2x8x1xf32>
    %121 = tpu.reciprocal %120 {approx = true} : vector<2x8x1xf32> -> vector<2x8x1xf32>
    %122 = vector.broadcast %121 : vector<2x8x1xf32> to vector<2x8x8xf32>
    %123 = arith.mulf %118, %122 : vector<2x8x8xf32>
    "tpu.trace_start"() <{level = 10 : i32, message = "bqk,bkd->bqd"}> : () -> ()
    %cst_36 = arith.constant dense<0.000000e+00> : vector<2x8x8xf32>
    %124 = tpu.matmul %123, %108, %cst_36 {dimension_numbers = #tpu.dot_dimension_numbers<[2], [1], [1], [2], [0, 0, 0, 1, 1, 2], [0], [0]>} : vector<2x8x8xf32>, vector<2x8x8xf32>, vector<2x8x8xf32> -> vector<2x8x8xf32>
    "tpu.trace_stop"() : () -> ()
    %125 = vector.shape_cast %124 : vector<2x8x8xf32> to vector<16x8xf32>
    %126 = tpu.concatenate %56, %79, %102, %125 in 1 : vector<16x8xf32>, vector<16x8xf32>, vector<16x8xf32>, vector<16x8xf32> -> vector<16x32xf32>
    %c0_37 = arith.constant 0 : index
    %c0_38 = arith.constant 0 : index
    %c0_39 = arith.constant 0 : index
    %127 = vector.load %arg11[%c0_37, %c0_38, %c0_39] : memref<2x6x32xf32, #tpu.memory_space<vmem>>, vector<1x6x32xf32>
    %128 = vector.shape_cast %127 : vector<1x6x32xf32> to vector<6x32xf32>
    %c0_40 = arith.constant 0 : index
    %c0_41 = arith.constant 0 : index
    %c0_42 = arith.constant 0 : index
    %129 = vector.load %arg6[%c0_40, %c0_41, %c0_42] : memref<2x32x32xf32, #tpu.memory_space<vmem>>, vector<1x32x32xf32>
    %130 = vector.shape_cast %129 : vector<1x32x32xf32> to vector<32x32xf32>
    %cst_43 = arith.constant dense<0.000000e+00> : vector<16x32xf32>
    %131 = tpu.matmul %126, %130, %cst_43 {dimension_numbers = #tpu.dot_dimension_numbers<[1], [0], [0], [1], [0, 0, 1, 1], [], []>} : vector<16x32xf32>, vector<32x32xf32>, vector<16x32xf32> -> vector<16x32xf32>
    %132 = vector.extract_strided_slice %128 {offsets = [0, 0], sizes = [1, 32], strides = [1, 1]} : vector<6x32xf32> to vector<1x32xf32>
    %133 = vector.broadcast %132 : vector<1x32xf32> to vector<16x32xf32>
    %134 = arith.addf %131, %133 : vector<16x32xf32>
    %135 = arith.addf %25, %134 : vector<16x32xf32>
    %136 = vector.extract_strided_slice %128 {offsets = [1, 0], sizes = [1, 32], strides = [1, 1]} : vector<6x32xf32> to vector<1x32xf32>
    %137 = vector.extract_strided_slice %128 {offsets = [2, 0], sizes = [1, 32], strides = [1, 1]} : vector<6x32xf32> to vector<1x32xf32>
    %cst_44 = arith.constant dense<0.000000e+00> : vector<16xf32>
    %138 = vector.multi_reduction <add>, %135, %cst_44 [1] : vector<16x32xf32> to vector<16xf32>
    %139 = vector.shape_cast %138 : vector<16xf32> to vector<16x1xf32>
    %cst_45 = arith.constant 3.200000e+01 : f32
    %140 = vector.broadcast %cst_45 : f32 to vector<16x1xf32>
    %141 = arith.divf %139, %140 : vector<16x1xf32>
    %142 = vector.broadcast %141 : vector<16x1xf32> to vector<16x32xf32>
    %143 = arith.subf %135, %142 : vector<16x32xf32>
    %144 = arith.mulf %143, %143 : vector<16x32xf32>
    %cst_46 = arith.constant dense<0.000000e+00> : vector<16xf32>
    %145 = vector.multi_reduction <add>, %144, %cst_46 [1] : vector<16x32xf32> to vector<16xf32>
    %146 = vector.shape_cast %145 : vector<16xf32> to vector<16x1xf32>
    %cst_47 = arith.constant 3.200000e+01 : f32
    %147 = vector.broadcast %cst_47 : f32 to vector<16x1xf32>
    %148 = arith.divf %146, %147 : vector<16x1xf32>
    %149 = vector.broadcast %141 : vector<16x1xf32> to vector<16x32xf32>
    %150 = arith.subf %135, %149 : vector<16x32xf32>
    %cst_48 = arith.constant 9.99999996E-13 : f32
    %151 = vector.broadcast %cst_48 : f32 to vector<16x1xf32>
    %152 = arith.addf %148, %151 : vector<16x1xf32>
    %153 = math.rsqrt %152 : vector<16x1xf32>
    %154 = vector.broadcast %153 : vector<16x1xf32> to vector<16x32xf32>
    %155 = arith.mulf %150, %154 : vector<16x32xf32>
    %156 = vector.broadcast %136 : vector<1x32xf32> to vector<16x32xf32>
    %157 = arith.mulf %155, %156 : vector<16x32xf32>
    %158 = vector.broadcast %137 : vector<1x32xf32> to vector<16x32xf32>
    %159 = arith.addf %157, %158 : vector<16x32xf32>
    %c0_49 = arith.constant 0 : index
    %c0_50 = arith.constant 0 : index
    %c0_51 = arith.constant 0 : index
    %160 = vector.load %arg7[%c0_49, %c0_50, %c0_51] : memref<2x32x64xf32, #tpu.memory_space<vmem>>, vector<1x32x64xf32>
    %161 = vector.shape_cast %160 : vector<1x32x64xf32> to vector<32x64xf32>
    %cst_52 = arith.constant dense<0.000000e+00> : vector<16x64xf32>
    %162 = tpu.matmul %159, %161, %cst_52 {dimension_numbers = #tpu.dot_dimension_numbers<[1], [0], [0], [1], [0, 0, 1, 1], [], []>} : vector<16x32xf32>, vector<32x64xf32>, vector<16x64xf32> -> vector<16x64xf32>
    %c0_53 = arith.constant 0 : index
    %c0_54 = arith.constant 0 : index
    %c0_55 = arith.constant 0 : index
    %163 = vector.load %arg10[%c0_53, %c0_54, %c0_55] : memref<2x1x64xf32, #tpu.memory_space<vmem>>, vector<1x1x64xf32>
    %164 = vector.shape_cast %163 : vector<1x1x64xf32> to vector<1x64xf32>
    %165 = vector.broadcast %164 : vector<1x64xf32> to vector<16x64xf32>
    %166 = arith.addf %162, %165 : vector<16x64xf32>
    %167 = arith.mulf %166, %166 : vector<16x64xf32>
    %168 = arith.mulf %166, %167 : vector<16x64xf32>
    %cst_56 = arith.constant 4.471500e-02 : f32
    %169 = vector.broadcast %cst_56 : f32 to vector<16x64xf32>
    %170 = arith.mulf %169, %168 : vector<16x64xf32>
    %171 = arith.addf %166, %170 : vector<16x64xf32>
    %cst_57 = arith.constant 0.797884583 : f32
    %172 = vector.broadcast %cst_57 : f32 to vector<16x64xf32>
    %173 = arith.mulf %172, %171 : vector<16x64xf32>
    %174 = math.tanh %173 : vector<16x64xf32>
    %cst_58 = arith.constant 1.000000e+00 : f32
    %175 = vector.broadcast %cst_58 : f32 to vector<16x64xf32>
    %176 = arith.addf %175, %174 : vector<16x64xf32>
    %cst_59 = arith.constant 5.000000e-01 : f32
    %177 = vector.broadcast %cst_59 : f32 to vector<16x64xf32>
    %178 = arith.mulf %177, %176 : vector<16x64xf32>
    %179 = arith.mulf %166, %178 : vector<16x64xf32>
    %c0_60 = arith.constant 0 : index
    %c0_61 = arith.constant 0 : index
    %c0_62 = arith.constant 0 : index
    %180 = vector.load %arg8[%c0_60, %c0_61, %c0_62] : memref<2x64x32xf32, #tpu.memory_space<vmem>>, vector<1x64x32xf32>
    %181 = vector.shape_cast %180 : vector<1x64x32xf32> to vector<64x32xf32>
    %cst_63 = arith.constant dense<0.000000e+00> : vector<16x32xf32>
    %182 = tpu.matmul %179, %181, %cst_63 {dimension_numbers = #tpu.dot_dimension_numbers<[1], [0], [0], [1], [0, 0, 1, 1], [], []>} : vector<16x64xf32>, vector<64x32xf32>, vector<16x32xf32> -> vector<16x32xf32>
    %183 = vector.extract_strided_slice %128 {offsets = [3, 0], sizes = [1, 32], strides = [1, 1]} : vector<6x32xf32> to vector<1x32xf32>
    %184 = vector.broadcast %183 : vector<1x32xf32> to vector<16x32xf32>
    %185 = arith.addf %182, %184 : vector<16x32xf32>
    %186 = arith.addf %159, %185 : vector<16x32xf32>
    %187 = vector.extract_strided_slice %128 {offsets = [4, 0], sizes = [1, 32], strides = [1, 1]} : vector<6x32xf32> to vector<1x32xf32>
    %188 = vector.extract_strided_slice %128 {offsets = [5, 0], sizes = [1, 32], strides = [1, 1]} : vector<6x32xf32> to vector<1x32xf32>
    %cst_64 = arith.constant dense<0.000000e+00> : vector<16xf32>
    %189 = vector.multi_reduction <add>, %186, %cst_64 [1] : vector<16x32xf32> to vector<16xf32>
    %190 = vector.shape_cast %189 : vector<16xf32> to vector<16x1xf32>
    %cst_65 = arith.constant 3.200000e+01 : f32
    %191 = vector.broadcast %cst_65 : f32 to vector<16x1xf32>
    %192 = arith.divf %190, %191 : vector<16x1xf32>
    %193 = vector.broadcast %192 : vector<16x1xf32> to vector<16x32xf32>
    %194 = arith.subf %186, %193 : vector<16x32xf32>
    %195 = arith.mulf %194, %194 : vector<16x32xf32>
    %cst_66 = arith.constant dense<0.000000e+00> : vector<16xf32>
    %196 = vector.multi_reduction <add>, %195, %cst_66 [1] : vector<16x32xf32> to vector<16xf32>
    %197 = vector.shape_cast %196 : vector<16xf32> to vector<16x1xf32>
    %cst_67 = arith.constant 3.200000e+01 : f32
    %198 = vector.broadcast %cst_67 : f32 to vector<16x1xf32>
    %199 = arith.divf %197, %198 : vector<16x1xf32>
    %200 = vector.broadcast %192 : vector<16x1xf32> to vector<16x32xf32>
    %201 = arith.subf %186, %200 : vector<16x32xf32>
    %cst_68 = arith.constant 9.99999996E-13 : f32
    %202 = vector.broadcast %cst_68 : f32 to vector<16x1xf32>
    %203 = arith.addf %199, %202 : vector<16x1xf32>
    %204 = math.rsqrt %203 : vector<16x1xf32>
    %205 = vector.broadcast %204 : vector<16x1xf32> to vector<16x32xf32>
    %206 = arith.mulf %201, %205 : vector<16x32xf32>
    %207 = vector.broadcast %187 : vector<1x32xf32> to vector<16x32xf32>
    %208 = arith.mulf %206, %207 : vector<16x32xf32>
    %209 = vector.broadcast %188 : vector<1x32xf32> to vector<16x32xf32>
    %210 = arith.addf %208, %209 : vector<16x32xf32>
    %c1 = arith.constant 1 : index
    %c0_69 = arith.constant 0 : index
    %c0_70 = arith.constant 0 : index
    %211 = vector.load %arg5[%c1, %c0_69, %c0_70] : memref<2x32x96xf32, #tpu.memory_space<vmem>>, vector<1x32x96xf32>
    %212 = vector.shape_cast %211 : vector<1x32x96xf32> to vector<32x96xf32>
    %cst_71 = arith.constant dense<0.000000e+00> : vector<16x96xf32>
    %213 = tpu.matmul %210, %212, %cst_71 {dimension_numbers = #tpu.dot_dimension_numbers<[1], [0], [0], [1], [0, 0, 1, 1], [], []>} : vector<16x32xf32>, vector<32x96xf32>, vector<16x96xf32> -> vector<16x96xf32>
    %c1_72 = arith.constant 1 : index
    %c0_73 = arith.constant 0 : index
    %c0_74 = arith.constant 0 : index
    %214 = vector.load %arg9[%c1_72, %c0_73, %c0_74] : memref<2x1x96xf32, #tpu.memory_space<vmem>>, vector<1x1x96xf32>
    %215 = vector.shape_cast %214 : vector<1x1x96xf32> to vector<1x96xf32>
    %216 = vector.broadcast %215 : vector<1x96xf32> to vector<16x96xf32>
    %217 = arith.addf %213, %216 : vector<16x96xf32>
    %218 = vector.extract_strided_slice %217 {offsets = [0, 0], sizes = [16, 8], strides = [1, 1]} : vector<16x96xf32> to vector<16x8xf32>
    %219 = vector.shape_cast %218 : vector<16x8xf32> to vector<2x8x8xf32>
    %220 = vector.extract_strided_slice %217 {offsets = [0, 32], sizes = [16, 8], strides = [1, 1]} : vector<16x96xf32> to vector<16x8xf32>
    %221 = vector.shape_cast %220 : vector<16x8xf32> to vector<2x8x8xf32>
    %222 = vector.extract_strided_slice %217 {offsets = [0, 64], sizes = [16, 8], strides = [1, 1]} : vector<16x96xf32> to vector<16x8xf32>
    %223 = vector.shape_cast %222 : vector<16x8xf32> to vector<2x8x8xf32>
    "tpu.trace_start"() <{level = 10 : i32, message = "bqd,bkd->bqk"}> : () -> ()
    %cst_75 = arith.constant dense<0.000000e+00> : vector<2x8x8xf32>
    %224 = tpu.matmul %219, %221, %cst_75 {dimension_numbers = #tpu.dot_dimension_numbers<[2], [2], [1], [1], [0, 0, 0, 1, 1, 1], [0], [0]>} : vector<2x8x8xf32>, vector<2x8x8xf32>, vector<2x8x8xf32> -> vector<2x8x8xf32>
    "tpu.trace_stop"() : () -> ()
    %cst_76 = arith.constant 0.353553385 : f32
    %225 = vector.broadcast %cst_76 : f32 to vector<2x8x8xf32>
    %226 = arith.mulf %224, %225 : vector<2x8x8xf32>
    %227 = vector.broadcast %26 : vector<2x1x8xf32> to vector<2x8x8xf32>
    %228 = arith.addf %226, %227 : vector<2x8x8xf32>
    %cst_77 = arith.constant dense<0xFF800000> : vector<2x8xf32>
    %229 = vector.multi_reduction <maximumf>, %228, %cst_77 [2] : vector<2x8x8xf32> to vector<2x8xf32>
    %230 = vector.shape_cast %229 : vector<2x8xf32> to vector<2x8x1xf32>
    %231 = vector.broadcast %230 : vector<2x8x1xf32> to vector<2x8x8xf32>
    %232 = arith.subf %228, %231 : vector<2x8x8xf32>
    %233 = math.exp %232 : vector<2x8x8xf32>
    %cst_78 = arith.constant dense<0.000000e+00> : vector<2x8xf32>
    %234 = vector.multi_reduction <add>, %233, %cst_78 [2] : vector<2x8x8xf32> to vector<2x8xf32>
    %235 = vector.shape_cast %234 : vector<2x8xf32> to vector<2x8x1xf32>
    %236 = tpu.reciprocal %235 {approx = true} : vector<2x8x1xf32> -> vector<2x8x1xf32>
    %237 = vector.broadcast %236 : vector<2x8x1xf32> to vector<2x8x8xf32>
    %238 = arith.mulf %233, %237 : vector<2x8x8xf32>
    "tpu.trace_start"() <{level = 10 : i32, message = "bqk,bkd->bqd"}> : () -> ()
    %cst_79 = arith.constant dense<0.000000e+00> : vector<2x8x8xf32>
    %239 = tpu.matmul %238, %223, %cst_79 {dimension_numbers = #tpu.dot_dimension_numbers<[2], [1], [1], [2], [0, 0, 0, 1, 1, 2], [0], [0]>} : vector<2x8x8xf32>, vector<2x8x8xf32>, vector<2x8x8xf32> -> vector<2x8x8xf32>
    "tpu.trace_stop"() : () -> ()
    %240 = vector.shape_cast %239 : vector<2x8x8xf32> to vector<16x8xf32>
    %241 = vector.extract_strided_slice %217 {offsets = [0, 8], sizes = [16, 8], strides = [1, 1]} : vector<16x96xf32> to vector<16x8xf32>
    %242 = vector.shape_cast %241 : vector<16x8xf32> to vector<2x8x8xf32>
    %243 = vector.extract_strided_slice %217 {offsets = [0, 40], sizes = [16, 8], strides = [1, 1]} : vector<16x96xf32> to vector<16x8xf32>
    %244 = vector.shape_cast %243 : vector<16x8xf32> to vector<2x8x8xf32>
    %245 = vector.extract_strided_slice %217 {offsets = [0, 72], sizes = [16, 8], strides = [1, 1]} : vector<16x96xf32> to vector<16x8xf32>
    %246 = vector.shape_cast %245 : vector<16x8xf32> to vector<2x8x8xf32>
    "tpu.trace_start"() <{level = 10 : i32, message = "bqd,bkd->bqk"}> : () -> ()
    %cst_80 = arith.constant dense<0.000000e+00> : vector<2x8x8xf32>
    %247 = tpu.matmul %242, %244, %cst_80 {dimension_numbers = #tpu.dot_dimension_numbers<[2], [2], [1], [1], [0, 0, 0, 1, 1, 1], [0], [0]>} : vector<2x8x8xf32>, vector<2x8x8xf32>, vector<2x8x8xf32> -> vector<2x8x8xf32>
    "tpu.trace_stop"() : () -> ()
    %cst_81 = arith.constant 0.353553385 : f32
    %248 = vector.broadcast %cst_81 : f32 to vector<2x8x8xf32>
    %249 = arith.mulf %247, %248 : vector<2x8x8xf32>
    %250 = vector.broadcast %26 : vector<2x1x8xf32> to vector<2x8x8xf32>
    %251 = arith.addf %249, %250 : vector<2x8x8xf32>
    %cst_82 = arith.constant dense<0xFF800000> : vector<2x8xf32>
    %252 = vector.multi_reduction <maximumf>, %251, %cst_82 [2] : vector<2x8x8xf32> to vector<2x8xf32>
    %253 = vector.shape_cast %252 : vector<2x8xf32> to vector<2x8x1xf32>
    %254 = vector.broadcast %253 : vector<2x8x1xf32> to vector<2x8x8xf32>
    %255 = arith.subf %251, %254 : vector<2x8x8xf32>
    %256 = math.exp %255 : vector<2x8x8xf32>
    %cst_83 = arith.constant dense<0.000000e+00> : vector<2x8xf32>
    %257 = vector.multi_reduction <add>, %256, %cst_83 [2] : vector<2x8x8xf32> to vector<2x8xf32>
    %258 = vector.shape_cast %257 : vector<2x8xf32> to vector<2x8x1xf32>
    %259 = tpu.reciprocal %258 {approx = true} : vector<2x8x1xf32> -> vector<2x8x1xf32>
    %260 = vector.broadcast %259 : vector<2x8x1xf32> to vector<2x8x8xf32>
    %261 = arith.mulf %256, %260 : vector<2x8x8xf32>
    "tpu.trace_start"() <{level = 10 : i32, message = "bqk,bkd->bqd"}> : () -> ()
    %cst_84 = arith.constant dense<0.000000e+00> : vector<2x8x8xf32>
    %262 = tpu.matmul %261, %246, %cst_84 {dimension_numbers = #tpu.dot_dimension_numbers<[2], [1], [1], [2], [0, 0, 0, 1, 1, 2], [0], [0]>} : vector<2x8x8xf32>, vector<2x8x8xf32>, vector<2x8x8xf32> -> vector<2x8x8xf32>
    "tpu.trace_stop"() : () -> ()
    %263 = vector.shape_cast %262 : vector<2x8x8xf32> to vector<16x8xf32>
    %264 = vector.extract_strided_slice %217 {offsets = [0, 16], sizes = [16, 8], strides = [1, 1]} : vector<16x96xf32> to vector<16x8xf32>
    %265 = vector.shape_cast %264 : vector<16x8xf32> to vector<2x8x8xf32>
    %266 = vector.extract_strided_slice %217 {offsets = [0, 48], sizes = [16, 8], strides = [1, 1]} : vector<16x96xf32> to vector<16x8xf32>
    %267 = vector.shape_cast %266 : vector<16x8xf32> to vector<2x8x8xf32>
    %268 = vector.extract_strided_slice %217 {offsets = [0, 80], sizes = [16, 8], strides = [1, 1]} : vector<16x96xf32> to vector<16x8xf32>
    %269 = vector.shape_cast %268 : vector<16x8xf32> to vector<2x8x8xf32>
    "tpu.trace_start"() <{level = 10 : i32, message = "bqd,bkd->bqk"}> : () -> ()
    %cst_85 = arith.constant dense<0.000000e+00> : vector<2x8x8xf32>
    %270 = tpu.matmul %265, %267, %cst_85 {dimension_numbers = #tpu.dot_dimension_numbers<[2], [2], [1], [1], [0, 0, 0, 1, 1, 1], [0], [0]>} : vector<2x8x8xf32>, vector<2x8x8xf32>, vector<2x8x8xf32> -> vector<2x8x8xf32>
    "tpu.trace_stop"() : () -> ()
    %cst_86 = arith.constant 0.353553385 : f32
    %271 = vector.broadcast %cst_86 : f32 to vector<2x8x8xf32>
    %272 = arith.mulf %270, %271 : vector<2x8x8xf32>
    %273 = vector.broadcast %26 : vector<2x1x8xf32> to vector<2x8x8xf32>
    %274 = arith.addf %272, %273 : vector<2x8x8xf32>
    %cst_87 = arith.constant dense<0xFF800000> : vector<2x8xf32>
    %275 = vector.multi_reduction <maximumf>, %274, %cst_87 [2] : vector<2x8x8xf32> to vector<2x8xf32>
    %276 = vector.shape_cast %275 : vector<2x8xf32> to vector<2x8x1xf32>
    %277 = vector.broadcast %276 : vector<2x8x1xf32> to vector<2x8x8xf32>
    %278 = arith.subf %274, %277 : vector<2x8x8xf32>
    %279 = math.exp %278 : vector<2x8x8xf32>
    %cst_88 = arith.constant dense<0.000000e+00> : vector<2x8xf32>
    %280 = vector.multi_reduction <add>, %279, %cst_88 [2] : vector<2x8x8xf32> to vector<2x8xf32>
    %281 = vector.shape_cast %280 : vector<2x8xf32> to vector<2x8x1xf32>
    %282 = tpu.reciprocal %281 {approx = true} : vector<2x8x1xf32> -> vector<2x8x1xf32>
    %283 = vector.broadcast %282 : vector<2x8x1xf32> to vector<2x8x8xf32>
    %284 = arith.mulf %279, %283 : vector<2x8x8xf32>
    "tpu.trace_start"() <{level = 10 : i32, message = "bqk,bkd->bqd"}> : () -> ()
    %cst_89 = arith.constant dense<0.000000e+00> : vector<2x8x8xf32>
    %285 = tpu.matmul %284, %269, %cst_89 {dimension_numbers = #tpu.dot_dimension_numbers<[2], [1], [1], [2], [0, 0, 0, 1, 1, 2], [0], [0]>} : vector<2x8x8xf32>, vector<2x8x8xf32>, vector<2x8x8xf32> -> vector<2x8x8xf32>
    "tpu.trace_stop"() : () -> ()
    %286 = vector.shape_cast %285 : vector<2x8x8xf32> to vector<16x8xf32>
    %287 = vector.extract_strided_slice %217 {offsets = [0, 24], sizes = [16, 8], strides = [1, 1]} : vector<16x96xf32> to vector<16x8xf32>
    %288 = vector.shape_cast %287 : vector<16x8xf32> to vector<2x8x8xf32>
    %289 = vector.extract_strided_slice %217 {offsets = [0, 56], sizes = [16, 8], strides = [1, 1]} : vector<16x96xf32> to vector<16x8xf32>
    %290 = vector.shape_cast %289 : vector<16x8xf32> to vector<2x8x8xf32>
    %291 = vector.extract_strided_slice %217 {offsets = [0, 88], sizes = [16, 8], strides = [1, 1]} : vector<16x96xf32> to vector<16x8xf32>
    %292 = vector.shape_cast %291 : vector<16x8xf32> to vector<2x8x8xf32>
    "tpu.trace_start"() <{level = 10 : i32, message = "bqd,bkd->bqk"}> : () -> ()
    %cst_90 = arith.constant dense<0.000000e+00> : vector<2x8x8xf32>
    %293 = tpu.matmul %288, %290, %cst_90 {dimension_numbers = #tpu.dot_dimension_numbers<[2], [2], [1], [1], [0, 0, 0, 1, 1, 1], [0], [0]>} : vector<2x8x8xf32>, vector<2x8x8xf32>, vector<2x8x8xf32> -> vector<2x8x8xf32>
    "tpu.trace_stop"() : () -> ()
    %cst_91 = arith.constant 0.353553385 : f32
    %294 = vector.broadcast %cst_91 : f32 to vector<2x8x8xf32>
    %295 = arith.mulf %293, %294 : vector<2x8x8xf32>
    %296 = vector.broadcast %26 : vector<2x1x8xf32> to vector<2x8x8xf32>
    %297 = arith.addf %295, %296 : vector<2x8x8xf32>
    %cst_92 = arith.constant dense<0xFF800000> : vector<2x8xf32>
    %298 = vector.multi_reduction <maximumf>, %297, %cst_92 [2] : vector<2x8x8xf32> to vector<2x8xf32>
    %299 = vector.shape_cast %298 : vector<2x8xf32> to vector<2x8x1xf32>
    %300 = vector.broadcast %299 : vector<2x8x1xf32> to vector<2x8x8xf32>
    %301 = arith.subf %297, %300 : vector<2x8x8xf32>
    %302 = math.exp %301 : vector<2x8x8xf32>
    %cst_93 = arith.constant dense<0.000000e+00> : vector<2x8xf32>
    %303 = vector.multi_reduction <add>, %302, %cst_93 [2] : vector<2x8x8xf32> to vector<2x8xf32>
    %304 = vector.shape_cast %303 : vector<2x8xf32> to vector<2x8x1xf32>
    %305 = tpu.reciprocal %304 {approx = true} : vector<2x8x1xf32> -> vector<2x8x1xf32>
    %306 = vector.broadcast %305 : vector<2x8x1xf32> to vector<2x8x8xf32>
    %307 = arith.mulf %302, %306 : vector<2x8x8xf32>
    "tpu.trace_start"() <{level = 10 : i32, message = "bqk,bkd->bqd"}> : () -> ()
    %cst_94 = arith.constant dense<0.000000e+00> : vector<2x8x8xf32>
    %308 = tpu.matmul %307, %292, %cst_94 {dimension_numbers = #tpu.dot_dimension_numbers<[2], [1], [1], [2], [0, 0, 0, 1, 1, 2], [0], [0]>} : vector<2x8x8xf32>, vector<2x8x8xf32>, vector<2x8x8xf32> -> vector<2x8x8xf32>
    "tpu.trace_stop"() : () -> ()
    %309 = vector.shape_cast %308 : vector<2x8x8xf32> to vector<16x8xf32>
    %310 = tpu.concatenate %240, %263, %286, %309 in 1 : vector<16x8xf32>, vector<16x8xf32>, vector<16x8xf32>, vector<16x8xf32> -> vector<16x32xf32>
    %c1_95 = arith.constant 1 : index
    %c0_96 = arith.constant 0 : index
    %c0_97 = arith.constant 0 : index
    %311 = vector.load %arg11[%c1_95, %c0_96, %c0_97] : memref<2x6x32xf32, #tpu.memory_space<vmem>>, vector<1x6x32xf32>
    %312 = vector.shape_cast %311 : vector<1x6x32xf32> to vector<6x32xf32>
    %c1_98 = arith.constant 1 : index
    %c0_99 = arith.constant 0 : index
    %c0_100 = arith.constant 0 : index
    %313 = vector.load %arg6[%c1_98, %c0_99, %c0_100] : memref<2x32x32xf32, #tpu.memory_space<vmem>>, vector<1x32x32xf32>
    %314 = vector.shape_cast %313 : vector<1x32x32xf32> to vector<32x32xf32>
    %cst_101 = arith.constant dense<0.000000e+00> : vector<16x32xf32>
    %315 = tpu.matmul %310, %314, %cst_101 {dimension_numbers = #tpu.dot_dimension_numbers<[1], [0], [0], [1], [0, 0, 1, 1], [], []>} : vector<16x32xf32>, vector<32x32xf32>, vector<16x32xf32> -> vector<16x32xf32>
    %316 = vector.extract_strided_slice %312 {offsets = [0, 0], sizes = [1, 32], strides = [1, 1]} : vector<6x32xf32> to vector<1x32xf32>
    %317 = vector.broadcast %316 : vector<1x32xf32> to vector<16x32xf32>
    %318 = arith.addf %315, %317 : vector<16x32xf32>
    %319 = arith.addf %210, %318 : vector<16x32xf32>
    %320 = vector.extract_strided_slice %312 {offsets = [1, 0], sizes = [1, 32], strides = [1, 1]} : vector<6x32xf32> to vector<1x32xf32>
    %321 = vector.extract_strided_slice %312 {offsets = [2, 0], sizes = [1, 32], strides = [1, 1]} : vector<6x32xf32> to vector<1x32xf32>
    %cst_102 = arith.constant dense<0.000000e+00> : vector<16xf32>
    %322 = vector.multi_reduction <add>, %319, %cst_102 [1] : vector<16x32xf32> to vector<16xf32>
    %323 = vector.shape_cast %322 : vector<16xf32> to vector<16x1xf32>
    %cst_103 = arith.constant 3.200000e+01 : f32
    %324 = vector.broadcast %cst_103 : f32 to vector<16x1xf32>
    %325 = arith.divf %323, %324 : vector<16x1xf32>
    %326 = vector.broadcast %325 : vector<16x1xf32> to vector<16x32xf32>
    %327 = arith.subf %319, %326 : vector<16x32xf32>
    %328 = arith.mulf %327, %327 : vector<16x32xf32>
    %cst_104 = arith.constant dense<0.000000e+00> : vector<16xf32>
    %329 = vector.multi_reduction <add>, %328, %cst_104 [1] : vector<16x32xf32> to vector<16xf32>
    %330 = vector.shape_cast %329 : vector<16xf32> to vector<16x1xf32>
    %cst_105 = arith.constant 3.200000e+01 : f32
    %331 = vector.broadcast %cst_105 : f32 to vector<16x1xf32>
    %332 = arith.divf %330, %331 : vector<16x1xf32>
    %333 = vector.broadcast %325 : vector<16x1xf32> to vector<16x32xf32>
    %334 = arith.subf %319, %333 : vector<16x32xf32>
    %cst_106 = arith.constant 9.99999996E-13 : f32
    %335 = vector.broadcast %cst_106 : f32 to vector<16x1xf32>
    %336 = arith.addf %332, %335 : vector<16x1xf32>
    %337 = math.rsqrt %336 : vector<16x1xf32>
    %338 = vector.broadcast %337 : vector<16x1xf32> to vector<16x32xf32>
    %339 = arith.mulf %334, %338 : vector<16x32xf32>
    %340 = vector.broadcast %320 : vector<1x32xf32> to vector<16x32xf32>
    %341 = arith.mulf %339, %340 : vector<16x32xf32>
    %342 = vector.broadcast %321 : vector<1x32xf32> to vector<16x32xf32>
    %343 = arith.addf %341, %342 : vector<16x32xf32>
    %c1_107 = arith.constant 1 : index
    %c0_108 = arith.constant 0 : index
    %c0_109 = arith.constant 0 : index
    %344 = vector.load %arg7[%c1_107, %c0_108, %c0_109] : memref<2x32x64xf32, #tpu.memory_space<vmem>>, vector<1x32x64xf32>
    %345 = vector.shape_cast %344 : vector<1x32x64xf32> to vector<32x64xf32>
    %cst_110 = arith.constant dense<0.000000e+00> : vector<16x64xf32>
    %346 = tpu.matmul %343, %345, %cst_110 {dimension_numbers = #tpu.dot_dimension_numbers<[1], [0], [0], [1], [0, 0, 1, 1], [], []>} : vector<16x32xf32>, vector<32x64xf32>, vector<16x64xf32> -> vector<16x64xf32>
    %c1_111 = arith.constant 1 : index
    %c0_112 = arith.constant 0 : index
    %c0_113 = arith.constant 0 : index
    %347 = vector.load %arg10[%c1_111, %c0_112, %c0_113] : memref<2x1x64xf32, #tpu.memory_space<vmem>>, vector<1x1x64xf32>
    %348 = vector.shape_cast %347 : vector<1x1x64xf32> to vector<1x64xf32>
    %349 = vector.broadcast %348 : vector<1x64xf32> to vector<16x64xf32>
    %350 = arith.addf %346, %349 : vector<16x64xf32>
    %351 = arith.mulf %350, %350 : vector<16x64xf32>
    %352 = arith.mulf %350, %351 : vector<16x64xf32>
    %cst_114 = arith.constant 4.471500e-02 : f32
    %353 = vector.broadcast %cst_114 : f32 to vector<16x64xf32>
    %354 = arith.mulf %353, %352 : vector<16x64xf32>
    %355 = arith.addf %350, %354 : vector<16x64xf32>
    %cst_115 = arith.constant 0.797884583 : f32
    %356 = vector.broadcast %cst_115 : f32 to vector<16x64xf32>
    %357 = arith.mulf %356, %355 : vector<16x64xf32>
    %358 = math.tanh %357 : vector<16x64xf32>
    %cst_116 = arith.constant 1.000000e+00 : f32
    %359 = vector.broadcast %cst_116 : f32 to vector<16x64xf32>
    %360 = arith.addf %359, %358 : vector<16x64xf32>
    %cst_117 = arith.constant 5.000000e-01 : f32
    %361 = vector.broadcast %cst_117 : f32 to vector<16x64xf32>
    %362 = arith.mulf %361, %360 : vector<16x64xf32>
    %363 = arith.mulf %350, %362 : vector<16x64xf32>
    %c1_118 = arith.constant 1 : index
    %c0_119 = arith.constant 0 : index
    %c0_120 = arith.constant 0 : index
    %364 = vector.load %arg8[%c1_118, %c0_119, %c0_120] : memref<2x64x32xf32, #tpu.memory_space<vmem>>, vector<1x64x32xf32>
    %365 = vector.shape_cast %364 : vector<1x64x32xf32> to vector<64x32xf32>
    %cst_121 = arith.constant dense<0.000000e+00> : vector<16x32xf32>
    %366 = tpu.matmul %363, %365, %cst_121 {dimension_numbers = #tpu.dot_dimension_numbers<[1], [0], [0], [1], [0, 0, 1, 1], [], []>} : vector<16x64xf32>, vector<64x32xf32>, vector<16x32xf32> -> vector<16x32xf32>
    %367 = vector.extract_strided_slice %312 {offsets = [3, 0], sizes = [1, 32], strides = [1, 1]} : vector<6x32xf32> to vector<1x32xf32>
    %368 = vector.broadcast %367 : vector<1x32xf32> to vector<16x32xf32>
    %369 = arith.addf %366, %368 : vector<16x32xf32>
    %370 = arith.addf %343, %369 : vector<16x32xf32>
    %371 = vector.extract_strided_slice %312 {offsets = [4, 0], sizes = [1, 32], strides = [1, 1]} : vector<6x32xf32> to vector<1x32xf32>
    %372 = vector.extract_strided_slice %312 {offsets = [5, 0], sizes = [1, 32], strides = [1, 1]} : vector<6x32xf32> to vector<1x32xf32>
    %cst_122 = arith.constant dense<0.000000e+00> : vector<16xf32>
    %373 = vector.multi_reduction <add>, %370, %cst_122 [1] : vector<16x32xf32> to vector<16xf32>
    %374 = vector.shape_cast %373 : vector<16xf32> to vector<16x1xf32>
    %cst_123 = arith.constant 3.200000e+01 : f32
    %375 = vector.broadcast %cst_123 : f32 to vector<16x1xf32>
    %376 = arith.divf %374, %375 : vector<16x1xf32>
    %377 = vector.broadcast %376 : vector<16x1xf32> to vector<16x32xf32>
    %378 = arith.subf %370, %377 : vector<16x32xf32>
    %379 = arith.mulf %378, %378 : vector<16x32xf32>
    %cst_124 = arith.constant dense<0.000000e+00> : vector<16xf32>
    %380 = vector.multi_reduction <add>, %379, %cst_124 [1] : vector<16x32xf32> to vector<16xf32>
    %381 = vector.shape_cast %380 : vector<16xf32> to vector<16x1xf32>
    %cst_125 = arith.constant 3.200000e+01 : f32
    %382 = vector.broadcast %cst_125 : f32 to vector<16x1xf32>
    %383 = arith.divf %381, %382 : vector<16x1xf32>
    %384 = vector.broadcast %376 : vector<16x1xf32> to vector<16x32xf32>
    %385 = arith.subf %370, %384 : vector<16x32xf32>
    %cst_126 = arith.constant 9.99999996E-13 : f32
    %386 = vector.broadcast %cst_126 : f32 to vector<16x1xf32>
    %387 = arith.addf %383, %386 : vector<16x1xf32>
    %388 = math.rsqrt %387 : vector<16x1xf32>
    %389 = vector.broadcast %388 : vector<16x1xf32> to vector<16x32xf32>
    %390 = arith.mulf %385, %389 : vector<16x32xf32>
    %391 = vector.broadcast %371 : vector<1x32xf32> to vector<16x32xf32>
    %392 = arith.mulf %390, %391 : vector<16x32xf32>
    %393 = vector.broadcast %372 : vector<1x32xf32> to vector<16x32xf32>
    %394 = arith.addf %392, %393 : vector<16x32xf32>
    %c0_127 = arith.constant 0 : index
    %c0_128 = arith.constant 0 : index
    %c0_129 = arith.constant 0 : index
    %395 = vector.load %arg3[%c0_127, %c0_128, %c0_129] : memref<2x1x8xf32, #tpu.memory_space<vmem>>, vector<2x1x8xf32>
    %396 = vector.shape_cast %394 : vector<16x32xf32> to vector<2x8x32xf32>
    "tpu.trace_start"() <{level = 10 : i32, message = "bqs,bsh->bqh"}> : () -> ()
    %cst_130 = arith.constant dense<0.000000e+00> : vector<2x1x32xf32>
    %397 = tpu.matmul %395, %396, %cst_130 {dimension_numbers = #tpu.dot_dimension_numbers<[2], [1], [1], [2], [0, 0, 0, 1, 1, 2], [0], [0]>} : vector<2x1x8xf32>, vector<2x8x32xf32>, vector<2x1x32xf32> -> vector<2x1x32xf32>
    "tpu.trace_stop"() : () -> ()
    %398 = vector.shape_cast %397 : vector<2x1x32xf32> to vector<2x32xf32>
    %c0_131 = arith.constant 0 : index
    %c0_132 = arith.constant 0 : index
    %399 = vector.load %arg12[%c0_131, %c0_132] : memref<32x128xf32, #tpu.memory_space<vmem>>, vector<32x128xf32>
    %cst_133 = arith.constant dense<0.000000e+00> : vector<2x128xf32>
    %400 = tpu.matmul %398, %399, %cst_133 {dimension_numbers = #tpu.dot_dimension_numbers<[1], [0], [0], [1], [0, 0, 1, 1], [], []>} : vector<2x32xf32>, vector<32x128xf32>, vector<2x128xf32> -> vector<2x128xf32>
    %c0_134 = arith.constant 0 : index
    %c0_135 = arith.constant 0 : index
    %401 = vector.load %arg13[%c0_134, %c0_135] : memref<1x128xf32, #tpu.memory_space<vmem>>, vector<1x128xf32>
    %402 = vector.broadcast %401 : vector<1x128xf32> to vector<2x128xf32>
    %403 = arith.addf %400, %402 : vector<2x128xf32>
    %c0_136 = arith.constant 0 : index
    %c0_137 = arith.constant 0 : index
    %404 = vector.load %arg14[%c0_136, %c0_137] : memref<2x128xf32, #tpu.memory_space<vmem>>, vector<2x128xf32>
    tpu.vector_store %arg14[%c0_136, %c0_137], %403 {strides = array<i32>} : memref<2x128xf32, #tpu.memory_space<vmem>>, vector<2x128xf32>,
    return
  }
  func.func @transform_0(%arg0: i32) -> (i32, i32) {
    %c0_i32 = arith.constant 0 : i32
    %c0_i32_0 = arith.constant 0 : i32
    %c0_i32_1 = arith.constant 0 : i32
    return %c0_i32, %c0_i32_0 : i32, i32
  }
  func.func @transform_1(%arg0: i32) -> (i32, i32, i32) {
    %c0_i32 = arith.constant 0 : i32
    %c0_i32_0 = arith.constant 0 : i32
    %c0_i32_1 = arith.constant 0 : i32
    %c0_i32_2 = arith.constant 0 : i32
    return %c0_i32, %c0_i32_0, %c0_i32_1 : i32, i32, i32
  }
  func.func @transform_2(%arg0: i32) -> (i32, i32, i32) {
    %c0_i32 = arith.constant 0 : i32
    %c0_i32_0 = arith.constant 0 : i32
    %c0_i32_1 = arith.constant 0 : i32
    %c0_i32_2 = arith.constant 0 : i32
    return %c0_i32, %c0_i32_0, %c0_i32_1 : i32, i32, i32
  }
  func.func @transform_3(%arg0: i32) -> (i32, i32) {
    %c0_i32 = arith.constant 0 : i32
    %c0_i32_0 = arith.constant 0 : i32
    %c0_i32_1 = arith.constant 0 : i32
    return %c0_i32, %c0_i32_0 : i32, i32
  }
  func.func @transform_4(%arg0: i32) -> (i32, i32, i32) {
    %c0_i32 = arith.constant 0 : i32
    %c0_i32_0 = arith.constant 0 : i32
    %c0_i32_1 = arith.constant 0 : i32
    %c0_i32_2 = arith.constant 0 : i32
    return %c0_i32, %c0_i32_0, %c0_i32_1 : i32, i32, i32
  }
  func.func @transform_5(%arg0: i32) -> (i32, i32, i32) {
    %c0_i32 = arith.constant 0 : i32
    %c0_i32_0 = arith.constant 0 : i32
    %c0_i32_1 = arith.constant 0 : i32
    %c0_i32_2 = arith.constant 0 : i32
    return %c0_i32, %c0_i32_0, %c0_i32_1 : i32, i32, i32
  }
  func.func @transform_6(%arg0: i32) -> (i32, i32, i32) {
    %c0_i32 = arith.constant 0 : i32
    %c0_i32_0 = arith.constant 0 : i32
    %c0_i32_1 = arith.constant 0 : i32
    %c0_i32_2 = arith.constant 0 : i32
    return %c0_i32, %c0_i32_0, %c0_i32_1 : i32, i32, i32
  }
  func.func @transform_7(%arg0: i32) -> (i32, i32, i32) {
    %c0_i32 = arith.constant 0 : i32
    %c0_i32_0 = arith.constant 0 : i32
    %c0_i32_1 = arith.constant 0 : i32
    %c0_i32_2 = arith.constant 0 : i32
    return %c0_i32, %c0_i32_0, %c0_i32_1 : i32, i32, i32
  }
  func.func @transform_8(%arg0: i32) -> (i32, i32, i32) {
    %c0_i32 = arith.constant 0 : i32
    %c0_i32_0 = arith.constant 0 : i32
    %c0_i32_1 = arith.constant 0 : i32
    %c0_i32_2 = arith.constant 0 : i32
    return %c0_i32, %c0_i32_0, %c0_i32_1 : i32, i32, i32
  }
  func.func @transform_9(%arg0: i32) -> (i32, i32, i32) {
    %c0_i32 = arith.constant 0 : i32
    %c0_i32_0 = arith.constant 0 : i32
    %c0_i32_1 = arith.constant 0 : i32
    %c0_i32_2 = arith.constant 0 : i32
    return %c0_i32, %c0_i32_0, %c0_i32_1 : i32, i32, i32
  }
  func.func @transform_10(%arg0: i32) -> (i32, i32, i32) {
    %c0_i32 = arith.constant 0 : i32
    %c0_i32_0 = arith.constant 0 : i32
    %c0_i32_1 = arith.constant 0 : i32
    %c0_i32_2 = arith.constant 0 : i32
    return %c0_i32, %c0_i32_0, %c0_i32_1 : i32, i32, i32
  }
  func.func @transform_11(%arg0: i32) -> (i32, i32) {
    %c0_i32 = arith.constant 0 : i32
    %c0_i32_0 = arith.constant 0 : i32
    %c0_i32_1 = arith.constant 0 : i32
    return %c0_i32, %c0_i32_0 : i32, i32
  }
  func.func @transform_12(%arg0: i32) -> (i32, i32) {
    %c0_i32 = arith.constant 0 : i32
    %c0_i32_0 = arith.constant 0 : i32
    %c0_i32_1 = arith.constant 0 : i32
    return %c0_i32, %c0_i32_0 : i32, i32
  }
  func.func @transform_13(%arg0: i32) -> (i32, i32) {
    %c0_i32 = arith.constant 0 : i32
    %c0_i32_0 = arith.constant 0 : i32
    %c0_i32_1 = arith.constant 0 : i32
    return %c0_i32, %c0_i32_0 : i32, i32
  }
}

</mosaic_0001>

<bundles_post_ra>
// kernel: tpu_custom_call.1
= control target key start
LH: loop header
LB: loop body
LE: loop exit
PB: predicated region body
PF: predicated region fallthrough
CT: control target
= control target key end

     0   :  { %18 = vsyncpa [#allocation3], 0  ;;  %s2944_s0 = inlined_call_operand.hbm [shape: f32[16,32], index: 0, kind: input, shape index: {}]   ;;  %s2945_s1 = inlined_call_operand.hbm [shape: f32[2,1,8], index: 1, kind: input, shape index: {}]   ;;  %s2946_s2 = inlined_call_operand.hbm [shape: f32[2,1,8], index: 2, kind: input, shape index: {}]   ;;  %s2947_s3 = inlined_call_operand.hbm [shape: f32[2,32], index: 3, kind: input, shape index: {}]   ;;  %s2948_s4 = inlined_call_operand.vmem [shape: f32[2,32,96], index: 4, kind: input, shape index: {}]   ;;  %s2949_s5 = inlined_call_operand.vmem [shape: f32[2,32,32], index: 5, kind: input, shape index: {}]   ;;  %s2950_s6 = inlined_call_operand.vmem [shape: f32[2,32,64], index: 6, kind: input, shape index: {}]   ;;  %s2951_s7 = inlined_call_operand.vmem [shape: f32[2,64,32], index: 7, kind: input, shape index: {}]   ;;  %s2952_s8 = inlined_call_operand.hbm [shape: f32[2,1,96], index: 8, kind: input, shape index: {}]   ;;  %s2953_s9 = inlined_call_operand.vmem [shape: f32[2,1,64], index: 9, kind: input, shape index: {}]   ;;  %s2954_s10 = inlined_call_operand.vmem [shape: f32[2,6,32], index: 10, kind: input, shape index: {}]   ;;  %s2955_s11 = inlined_call_operand.vmem [shape: f32[32,128], index: 11, kind: input, shape index: {}]   ;;  %s2956_s12 = inlined_call_operand.vmem [shape: f32[1,128], index: 12, kind: input, shape index: {}]   ;;  %s2957_s13 = inlined_call_operand.hbm [shape: f32[2,128], index: 13, kind: output, shape index: {}]  }
   0x1   :  { %19 = vsyncpa [#allocation6], 0 }
   0x2   :  { %20 = vsyncpa [#allocation9], 0  ;;  %s39_s27 = sshll.u32 %s2945_s1, 4  ;;  %s40_s27 = int_to_ptr.hbm [resolvable:$true] %s39_s27 }
   0x3   :  { %21 = vsyncpa [#allocation4], 0  ;;  %s2361_s28 = smov [#allocation5]   ;;  %s66_s15 = sshll.u32 %s2947_s3, 4  ;;  %s67_s15 = int_to_ptr.hbm [resolvable:$true] %s66_s15 }
   0x4   :  { %s41_s29 = sshll.u32 %s2361_s28, 4  ;;  %s2960_s16 = smov 16   ;;  %s42_s29 = int_to_ptr.vmem [resolvable:$true] %s41_s29 }
   0x5   :  { %s2363_s17 = smov 1   ;;  %s2364_s18 = smov [#allocation8]  }
   0x6   :  { %47 = dma.hbm_to_vmem [thread:$0]  %s40_s27, 32, %s42_s29, [#allocation6], %s2960_s16, %s2960_s16, %s2363_s17  }
   0x7   :  { %s68_s19 = sshll.u32 %s2364_s18, 4  ;;  %s26_s21 = sshll.u32 %s2944_s0, 4  ;;  %s69_s19 = int_to_ptr.vmem [resolvable:$true] %s68_s19  ;;  %s27_s21 = int_to_ptr.hbm [resolvable:$true] %s26_s21 }
   0x8   :  { %71 = dma.hbm_to_vmem [thread:$0]  %s67_s15, 32, %s69_s19, [#allocation9]  }
   0x9   :  { %s2365_s22 = smov [#allocation2]   ;;  %s52_s25 = sshll.u32 %s2946_s2, 4  ;;  %s53_s25 = int_to_ptr.hbm [resolvable:$true] %s52_s25 }
   0xa   :  { %s28_s23 = sshll.u32 %s2365_s22, 4  ;;  %s2366_s26 = smov 128   ;;  %s29_s23 = int_to_ptr.vmem [resolvable:$true] %s28_s23 }
   0xb   :  { %s2367_s28 = smov 8   ;;  %s2368_s27 = smov [#allocation7]  }
   0xc   :  { %34 = dma.hbm_to_vmem [thread:$0]  %s27_s21, 256, %s29_s23, [#allocation3], %s2366_s26, %s2366_s26, %s2367_s28  }
   0xd   :  { %s54_s29 = sshll.u32 %s2368_s27, 4  ;;  %s84_s0 = sshll.u32 %s2952_s8, 4  ;;  %s55_s29 = int_to_ptr.vmem [resolvable:$true] %s54_s29  ;;  %s85_s0 = int_to_ptr.hbm [resolvable:$true] %s84_s0 }
   0xe   :  { %60 = dma.hbm_to_vmem [thread:$0]  %s53_s25, 32, %s55_s29, [#allocation6], %s2960_s16, %s2960_s16, %s2363_s17  }
   0xf   :  { %s2369_s15 = smov [#allocation10]  }
  0x10   :  { %s86_s18 = sshll.u32 %s2369_s15, 4  ;;  %s87_s18 = int_to_ptr.vmem [resolvable:$true] %s86_s18 }
  0x11   :  { %92 = dma.hbm_to_vmem [thread:$0]  %s85_s0, 32, %s87_s18, [#allocation9], %s2960_s16, %s2960_s16, %s2363_s17  }
  0x12   :  { %2353 = dma.done.wait [#allocation3], 256  }
  0x13   :  { %2354 = vsyncadd [#allocation3], 4294967040 }
  0x14   :  { %2355 = dma.done.wait [#allocation6], 64  }
  0x15   :  { %2356 = vsyncadd [#allocation6], 4294967232 }
  0x16   :  { %2357 = dma.done.wait [#allocation9], 64  }
  0x17   :  { %2358 = vsyncadd [#allocation9], 4294967232  ;;  %vm124_vm0 = vcmask 261120   ;;  %v121_v0 = vld [vmem:[#allocation2] sm:$0xff]  ;;  %v122_v2 = vld [vmem:[#allocation2 + $0x8] sm:$0xff]  ;;  %v2370_v4 = vmov 32.0  }
  0x18   :  { %v125_v1 = vsel %vm124_vm0, %v121_v0, 0.0  ;;  %v128_v3 = vsel %vm124_vm0, %v122_v2, 0.0  ;;  %2114 = vrcp.f32 %v2370_v4  ;;  %v187_v21 = vld [vmem:[%s2948_s4 + $0x18] sm:$0xff]  ;;  %v186_v22 = vld [vmem:[%s2948_s4 + $0x10] sm:$0xff]  ;;  %v185_v23 = vld [vmem:[%s2948_s4 + $0x8] sm:$0xff]  ;;  %s2371_s23 = smov 96  }
  0x19   :  { %126 = vadd.xlane.f32.xlu0 %v125_v1  ;;  %210 = vmatpush.msra.mxu0 %v187_v21  ;;  %v184_v24 = vld [vmem:[%s2948_s4] sm:$0xff]  ;;  %v123_v36 = vld [vmem:[#allocation8] sm:$0x3]  ;;  %v2107_v54 = vld [vmem:[#allocation10] ss:$0 sm:$0xff]  ;;  %vm224_vm8 = vcmask 64512  }
  0x1a   :  { %v176_v40 = vperm.slane %v123_v36, 0  ;;  %v179_v44 = vperm.slane %v123_v36, 1  ;;  %v2523_v61 = vld [vmem:[#allocation5] ss:$0 sm:$0xff]  ;;  %s2372_s3 = smov 64   ;;  %s2373_s24 = smov 88  }
  0x1b   :  { %211 = vmatpush.msra.mxu0 %v186_v22  ;;  %s2374_s25 = smov 80   ;;  %s2375_s26 = smov 120   ;;  %vm788_vm9 = vcmask 130048   ;;  %vm791_vm10 = vcmask 195584  }
  0x1c   :  { %s2376_s27 = smov 112   ;;  %s2377_s29 = smov 104  }
  0x1d   :  { %212 = vmatpush.msra.mxu0 %v185_v23  ;;  %s2378_s30 = smov 72   ;;  %s2379_s14 = smov 56  }
  0x1e   :  { %v2115_v5 = vpop.eup %2114  ;;  %s2380_s0 = smov 40   ;;  %s2381_s15 = smov 48  }
  0x1f   :  { %v132_v6 = vmul.f32 32.0, %v2115_v5  ;;  %vm136_vm1 = vweird.f32 %v2115_v5  ;;  %213 = vmatpush.msra.mxu0 %v184_v24  ;;  %s2958_s18 = smov 24   ;;  %s1958_s21 = sshll.u32 %s2957_s13, 4  ;;  %s1959_s21 = int_to_ptr.hbm [resolvable:$true] %s1958_s21 }
  0x21   :  { %129 = vadd.xlane.f32.xlu0 %v128_v3  ;;  %v133_v7 = vsub.f32 1.0, %v132_v6 }
  0x23   :  { %v134_v8 = vmul.f32 %v2115_v5, %v133_v7 }
  0x25   :  { %v135_v9 = vadd.f32 %v2115_v5, %v134_v8 }
  0x27   :  { %v2481_v10 = vsel %vm136_vm1, %v2115_v5, %v135_v9 }
  0x8c   :  { %v127_v11 = vpop.xlane.xlu0 %126 }
  0x8d   :  { %v138_v12 = vmul.f32 %v2481_v10, %v127_v11 }
  0x8f   :  { %v140_v13 = vsub.f32 %v121_v0, %v138_v12 }
  0x91   :  { %v142_v14 = vmul.f32 %v140_v13, %v140_v13 }
  0x93   :  { %v144_v15 = vsel %vm124_vm0, %v142_v14, 0.0 }
  0x94   :  { %145 = vadd.xlane.f32.xlu1 %v144_v15  ;;  %v130_v16 = vpop.xlane.xlu0 %129 }
  0x95   :  { %v139_v17 = vmul.f32 %v2481_v10, %v130_v16 }
  0x97   :  { %v141_v18 = vsub.f32 %v122_v2, %v139_v17  ;;  %v2527_v2 = vld [vmem:[#allocation5 + $0x1] ss:$0 sm:$0xff] }
  0x99   :  { %v143_v19 = vmul.f32 %v141_v18, %v141_v18 }
  0x9b   :  { %v147_v20 = vsel %vm124_vm0, %v143_v19, 0.0 }
  0x9c   :  { %148 = vadd.xlane.f32.xlu1 %v147_v20 }
 0x107   :  { %v146_v25 = vpop.xlane.xlu1 %145 }
 0x108   :  { %v150_v26 = vmul.f32 %v146_v25, %v2481_v10 }
 0x10a   :  { %v152_v27 = vadd.f32 1e-12, %v150_v26 }
 0x10c   :  { %2116 = vrsqrt.f32 %v152_v27  ;;  %vm160_vm3 = vweird.f32 %v152_v27 }
 0x10f   :  { %v149_v28 = vpop.xlane.xlu1 %148 }
 0x110   :  { %v151_v29 = vmul.f32 %v149_v28, %v2481_v10 }
 0x112   :  { %v2117_v30 = vpop.eup %2116  ;;  %v153_v31 = vadd.f32 1e-12, %v151_v29 }
 0x113   :  { %v155_v32 = vmul.f32 %v2117_v30, %v152_v27  ;;  %vm161_vm2 = vweird.f32 %v2117_v30 }
 0x114   :  { %2118 = vrsqrt.f32 %v153_v31  ;;  %vm162_vm4 = vmor %vm160_vm3, %vm161_vm2  ;;  %vm170_vm6 = vweird.f32 %v153_v31  ;;  %vm945_vm2 = vcmask 523264  }
 0x115   :  { %v156_v33 = vmul.f32 %v2117_v30, %v155_v32 }
 0x117   :  { %v157_v34 = vmul.f32 0.5, %v156_v33 }
 0x119   :  { %v158_v35 = vsub.f32 1.5, %v157_v34 }
 0x11a   :  { %v2119_v37 = vpop.eup %2118 }
 0x11b   :  { %v159_v38 = vmul.f32 %v2117_v30, %v158_v35  ;;  %v165_v39 = vmul.f32 %v2119_v37, %v153_v31  ;;  %vm171_vm5 = vweird.f32 %v2119_v37 }
 0x11c   :  { %vm172_vm7 = vmor %vm170_vm6, %vm171_vm5 }
 0x11d   :  { %v163_v41 = vsel %vm162_vm4, %v2117_v30, %v159_v38  ;;  %v166_v42 = vmul.f32 %v2119_v37, %v165_v39 }
 0x11e   :  { %v174_v43 = vmul.f32 %v163_v41, %v140_v13 }
 0x11f   :  { %v167_v45 = vmul.f32 0.5, %v166_v42 }
 0x120   :  { %v177_v46 = vmul.f32 %v176_v40, %v174_v43 }
 0x121   :  { %v168_v47 = vsub.f32 1.5, %v167_v45 }
 0x122   :  { %v2501_v48 = vadd.f32 %v179_v44, %v177_v46 }
 0x123   :  { %v169_v49 = vmul.f32 %v2119_v37, %v168_v47 }
 0x124   :  { %1970 = vmatmul.msk.f32.vlgmr.msra.gmra.mxu0 %vm124_vm0, %v2501_v48 }
 0x125   :  { %v173_v50 = vsel %vm172_vm7, %v2119_v37, %v169_v49 }
 0x126   :  { %v175_v51 = vmul.f32 %v173_v50, %v141_v18 }
 0x128   :  { %v178_v52 = vmul.f32 %v176_v40, %v175_v51 }
 0x12a   :  { %v2505_v53 = vadd.f32 %v179_v44, %v178_v52 }
 0x12c   :  { %1971 = vmatmul.msk.f32.gmra.mxu0 %vm124_vm0, %v2505_v53 }
 0x1a1   :  { %v215_v55 = vpop.f32.mrf.mxu0 }
 0x1a2   :  { %v2509_v56 = vadd.f32 %v2107_v54, %v215_v55 }
 0x1a4   :  { %222 = vrot.lane.b32.xlu2 %v2509_v56, %s2371_s23 }
 0x1a9   :  { %v218_v57 = vpop.f32.mrf.mxu0 }
 0x1aa   :  { %v2513_v58 = vadd.f32 %v2107_v54, %v218_v57 }
 0x1ac   :  { %250 = vrot.lane.b32.xlu2 %v2513_v58, %s2371_s23 }
 0x1fe   :  { %v223_v59 = vpop.permute.xlu2 %222 }
 0x1ff   :  { %1972 = vmatpush.xpose.msk.msra.mxu1 %vm224_vm8, %v223_v59 }
 0x202   :  { %1973 = vmatmul.msk.f32.vlgmr.msra.gmra.mxu1 %vm224_vm8, %v2509_v56 }
 0x206   :  { %v251_v60 = vpop.permute.xlu2 %250 }
 0x207   :  { %1974 = vmatpush.xpose.msk.msra.mxu2 %vm224_vm8, %v251_v60 }
 0x20a   :  { %1975 = vmatmul.msk.f32.vlgmr.msra.gmra.mxu2 %vm224_vm8, %v2513_v58 }
 0x27f   :  { %v246_v62 = vpop.f32.mrf.mxu1 }
 0x280   :  { %v276_v63 = vmul.f32 0.35355338, %v246_v62 }
 0x282   :  { %v284_v0 = vadd.f32 %v2523_v61, %v276_v63 }
 0x284   :  { %v286_v1 = vsel %vm224_vm8, %v284_v0, -inf }
 0x285   :  { %287 = vmax.xlane.f32.xlu0 %v286_v1 }
 0x28d   :  { %v273_v3 = vpop.f32.mrf.mxu2 }
 0x28e   :  { %v277_v4 = vmul.f32 0.35355338, %v273_v3 }
 0x290   :  { %v285_v5 = vadd.f32 %v2527_v2, %v277_v4 }
 0x292   :  { %v289_v6 = vsel %vm224_vm8, %v285_v5, -inf }
 0x293   :  { %290 = vmax.xlane.f32.xlu1 %v289_v6  ;;  %v2082_v6 = vpack.i.bf16 %v2513_v58, %v2509_v56 }
 0x299   :  { %334 = vrot.lane.b32.xlu0 %v2513_v58, %s2372_s3 }
 0x2a1   :  { %390 = vrot.lane.b32.xlu0 %v2513_v58, %s2373_s24 }
 0x2a9   :  { %496 = vrot.lane.b32.xlu0 %v2509_v56, %s2374_s25 }
 0x2ac   :  { %308 = vrot.lane.b32.xlu1 %v2509_v56, %s2372_s3 }
 0x2b4   :  { %362 = vrot.lane.b32.xlu1 %v2509_v56, %s2373_s24 }
 0x2bc   :  { %360 = vrot.lane.b32.xlu1 %v2509_v56, %s2375_s26 }
 0x2c4   :  { %494 = vrot.lane.b32.xlu1 %v2509_v56, %s2376_s27 }
 0x2cc   :  { %628 = vrot.lane.b32.xlu1 %v2509_v56, %s2377_s29 }
 0x2d4   :  { %522 = vrot.lane.b32.xlu1 %v2513_v58, %s2376_s27 }
 0x2f8   :  { %v288_v7 = vpop.xlane.xlu0 %287 }
 0x2f9   :  { %v292_v8 = vsub.f32 %v284_v0, %v288_v7 }
 0x2fb   :  { %v294_v9 = vmul.f32 1.442695, %v292_v8 }
 0x2fd   :  { %2120 = vpow2.f32 %v294_v9 }
 0x303   :  { %v2121_v11 = vpop.eup %2120 }
 0x304   :  { %v298_v12 = vsel %vm224_vm8, %v2121_v11, 0.0 }
 0x305   :  { %299 = vadd.xlane.f32.xlu2 %v298_v12 }
 0x306   :  { %v291_v13 = vpop.xlane.xlu1 %290 }
 0x307   :  { %v293_v14 = vsub.f32 %v285_v5, %v291_v13 }
 0x309   :  { %v296_v15 = vmul.f32 1.442695, %v293_v14 }
 0x30b   :  { %2122 = vpow2.f32 %v296_v15  ;;  %v335_v16 = vpop.permute.xlu0 %334 }
 0x311   :  { %v2123_v17 = vpop.eup %2122 }
 0x312   :  { %v301_v18 = vsel %vm224_vm8, %v2123_v17, 0.0 }
 0x313   :  { %302 = vadd.xlane.f32.xlu0 %v301_v18  ;;  %v391_v19 = vpop.permute.xlu0 %390 }
 0x314   :  { %1980 = vmatpush.xpose.msk.msrb.mxu2 %vm224_vm8, %v391_v19 }
 0x31b   :  { %v497_v20 = vpop.permute.xlu0 %496 }
 0x31c   :  { %1984 = vmatpush.xpose.msk.msra.mxu2 %vm224_vm8, %v497_v20 }
 0x31d   :  { %388 = vrot.lane.b32.xlu2 %v2513_v58, %s2375_s26 }
 0x31e   :  { %v309_v21 = vpop.permute.xlu1 %308 }
 0x31f   :  { %329 = vmatpush.msra.mxu3 %v309_v21 }
 0x321   :  { %355 = vmatpush.msrb.mxu3 %v335_v16 }
 0x325   :  { %658 = vrot.lane.b32.xlu2 %v2513_v58, %s2378_s30 }
 0x326   :  { %v363_v22 = vpop.permute.xlu1 %362 }
 0x327   :  { %630 = vrot.lane.b32.xlu0 %v2509_v56, %s2378_s30 }
 0x32e   :  { %v361_v24 = vpop.permute.xlu1 %360 }
 0x32f   :  { %524 = vrot.lane.b32.xlu0 %v2513_v58, %s2374_s25 }
 0x336   :  { %v495_v29 = vpop.permute.xlu1 %494 }
 0x337   :  { %656 = vrot.lane.b32.xlu0 %v2513_v58, %s2377_s29 }
 0x33e   :  { %v629_v33 = vpop.permute.xlu1 %628 }
 0x346   :  { %v523_v36 = vpop.permute.xlu1 %522 }
 0x378   :  { %v300_v23 = vpop.xlane.xlu2 %299 }
 0x379   :  { %2124 = vrcp.f32 %v300_v23 }
 0x37f   :  { %v2125_v25 = vpop.eup %2124 }
 0x380   :  { %v389_v26 = vpop.permute.xlu2 %388  ;;  %v306_v27 = vmul.f32 %v2125_v25, %v2121_v11 }
 0x381   :  { %1981 = vmatmul.msk.f32.vlgmr.msrb.gmra.mxu2 %vm224_vm8, %v389_v26 }
 0x382   :  { %1976 = vmatmul.msk.f32.vlgmr.msra.gmra.mxu3 %vm224_vm8, %v306_v27 }
 0x383   :  { %1978 = vmatpush.xpose.msk.msra.mxu3 %vm224_vm8, %v363_v22 }
 0x386   :  { %v303_v28 = vpop.xlane.xlu0 %302 }
 0x387   :  { %2126 = vrcp.f32 %v303_v28 }
 0x388   :  { %v659_v35 = vpop.permute.xlu2 %658 }
 0x389   :  { %1985 = vmatmul.msk.f32.vlgmr.msra.gmra.mxu2 %vm224_vm8, %v495_v29 }
 0x38d   :  { %v2127_v30 = vpop.eup %2126 }
 0x38e   :  { %v307_v31 = vmul.f32 %v2127_v30, %v2123_v17 }
 0x390   :  { %1977 = vmatmul.msk.f32.vlgmr.msrb.gmra.mxu3 %vm224_vm8, %v307_v31 }
 0x398   :  { %1979 = vmatmul.msk.f32.vlgmr.msra.gmra.mxu3 %vm224_vm8, %v361_v24 }
 0x399   :  { %v631_v32 = vpop.permute.xlu0 %630 }
 0x39a   :  { %1990 = vmatpush.xpose.msk.msrb.mxu2 %vm224_vm8, %v631_v32 }
 0x39d   :  { %1991 = vmatmul.msk.f32.vlgmr.msrb.gmra.mxu2 %vm224_vm8, %v629_v33 }
 0x3a1   :  { %v525_v34 = vpop.permute.xlu0 %524 }
 0x3a2   :  { %1986 = vmatpush.xpose.msk.msrb.mxu0 %vm224_vm8, %v525_v34 }
 0x3a5   :  { %1987 = vmatmul.msk.f32.vlgmr.msrb.gmra.mxu0 %vm224_vm8, %v523_v36 }
 0x3a6   :  { %1992 = vmatpush.xpose.msk.msra.mxu0 %vm224_vm8, %v659_v35 }
 0x3a9   :  { %v657_v37 = vpop.permute.xlu0 %656 }
 0x3ad   :  { %1993 = vmatmul.msk.f32.vlgmr.msra.gmra.mxu0 %vm224_vm8, %v657_v37 }
 0x404   :  { %v413_v38 = vpop.f32.mrf.mxu2 }
 0x405   :  { %v417_v39 = vmul.f32 0.35355338, %v413_v38  ;;  %v2577_v42 = vpop.f32.mrf.mxu3 }
 0x407   :  { %v419_v40 = vadd.f32 %v2527_v2, %v417_v39 }
 0x409   :  { %v423_v41 = vsel %vm224_vm8, %v419_v40, -inf }
 0x40a   :  { %424 = vmax.xlane.f32.xlu0 %v423_v41 }
 0x40c   :  { %v519_v43 = vpop.f32.mrf.mxu2 }
 0x40d   :  { %v550_v44 = vmul.f32 0.35355338, %v519_v43 }
 0x40f   :  { %v552_v45 = vadd.f32 %v2523_v61, %v550_v44 }
 0x411   :  { %v554_v46 = vsel %vm224_vm8, %v552_v45, -inf }
 0x412   :  { %555 = vmax.xlane.f32.xlu2 %v554_v46 }
 0x413   :  { %v2581_v47 = vpop.f32.mrf.mxu3 }
 0x41b   :  { %v385_v49 = vpop.f32.mrf.mxu3 }
 0x41c   :  { %v416_v50 = vmul.f32 0.35355338, %v385_v49 }
 0x41e   :  { %v418_v51 = vadd.f32 %v2523_v61, %v416_v50 }
 0x420   :  { %v653_v52 = vpop.f32.mrf.mxu2  ;;  %v420_v54 = vsel %vm224_vm8, %v418_v51, -inf }
 0x421   :  { %v684_v55 = vmul.f32 0.35355338, %v653_v52  ;;  %421 = vmax.xlane.f32.xlu1 %v420_v54 }
 0x422   :  { %v547_v57 = vpop.f32.mrf.mxu0 }
 0x423   :  { %v551_v59 = vmul.f32 0.35355338, %v547_v57  ;;  %v686_v60 = vadd.f32 %v2523_v61, %v684_v55 }
 0x425   :  { %v688_v62 = vsel %vm224_vm8, %v686_v60, -inf  ;;  %v553_v63 = vadd.f32 %v2527_v2, %v551_v59 }
 0x426   :  { %689 = vmax.xlane.f32.xlu2 %v688_v62 }
 0x427   :  { %v557_v0 = vsel %vm224_vm8, %v553_v63, -inf }
 0x429   :  { %558 = vmax.xlane.f32.xlu1 %v557_v0 }
 0x42a   :  { %v681_v1 = vpop.f32.mrf.mxu0 }
 0x42b   :  { %v685_v3 = vmul.f32 0.35355338, %v681_v1 }
 0x42d   :  { %v687_v4 = vadd.f32 %v2527_v2, %v685_v3 }
 0x42f   :  { %v691_v5 = vsel %vm224_vm8, %v687_v4, -inf }
 0x430   :  { %692 = vmax.xlane.f32.xlu0 %v691_v5 }
 0x444   :  { %2083 = vrot.lane.b32.xlu0 %v2082_v6, %s2379_s14 }
 0x44c   :  { %710 = vrot.lane.b32.xlu0 %v2509_v56, %s2380_s0 }
 0x454   :  { %602 = vrot.lane.b32.xlu0 %v2513_v58, %s2381_s15 }
 0x47d   :  { %v425_v7 = vpop.xlane.xlu0 %424 }
 0x47e   :  { %v427_v8 = vsub.f32 %v419_v40, %v425_v7 }
 0x480   :  { %v430_v9 = vmul.f32 1.442695, %v427_v8 }
 0x482   :  { %2128 = vpow2.f32 %v430_v9 }
 0x485   :  { %v556_v11 = vpop.xlane.xlu2 %555 }
 0x486   :  { %v560_v12 = vsub.f32 %v552_v45, %v556_v11 }
 0x488   :  { %v2129_v13 = vpop.eup %2128  ;;  %v562_v14 = vmul.f32 1.442695, %v560_v12  ;;  %v798_v12 = vld [vmem:[%s2949_s5 + $0x18] sm:$0xff] }
 0x489   :  { %v435_v15 = vsel %vm224_vm8, %v2129_v13, 0.0  ;;  %818 = vmatpush.msra.mxu2 %v798_v12 }
 0x48a   :  { %2130 = vpow2.f32 %v562_v14  ;;  %436 = vadd.xlane.f32.xlu2 %v435_v15  ;;  %v796_v14 = vld [vmem:[%s2949_s5 + $0x8] sm:$0xff]  ;;  %v795_v15 = vld [vmem:[%s2949_s5] sm:$0xff] }
 0x490   :  { %v2131_v16 = vpop.eup %2130 }
 0x491   :  { %v566_v17 = vsel %vm224_vm8, %v2131_v16, 0.0 }
 0x492   :  { %567 = vadd.xlane.f32.xlu1 %v566_v17 }
 0x494   :  { %v422_v18 = vpop.xlane.xlu1 %421 }
 0x495   :  { %v426_v19 = vsub.f32 %v418_v51, %v422_v18 }
 0x497   :  { %v428_v20 = vmul.f32 1.442695, %v426_v19 }
 0x499   :  { %2132 = vpow2.f32 %v428_v20  ;;  %v690_v21 = vpop.xlane.xlu2 %689 }
 0x49a   :  { %v694_v22 = vsub.f32 %v686_v60, %v690_v21 }
 0x49c   :  { %v696_v23 = vmul.f32 1.442695, %v694_v22  ;;  %v559_v24 = vpop.xlane.xlu1 %558 }
 0x49d   :  { %v561_v25 = vsub.f32 %v553_v63, %v559_v24 }
 0x49e   :  { %2134 = vpow2.f32 %v696_v23 }
 0x49f   :  { %v2133_v26 = vpop.eup %2132  ;;  %v564_v27 = vmul.f32 1.442695, %v561_v25 }
 0x4a0   :  { %v432_v28 = vsel %vm224_vm8, %v2133_v26, 0.0 }
 0x4a1   :  { %433 = vadd.xlane.f32.xlu2 %v432_v28  ;;  %2136 = vpow2.f32 %v564_v27 }
 0x4a3   :  { %v693_v29 = vpop.xlane.xlu0 %692 }
 0x4a4   :  { %v2135_v30 = vpop.eup %2134  ;;  %v695_v31 = vsub.f32 %v687_v4, %v693_v29 }
 0x4a5   :  { %v700_v32 = vsel %vm224_vm8, %v2135_v30, 0.0 }
 0x4a6   :  { %701 = vadd.xlane.f32.xlu1 %v700_v32  ;;  %v698_v33 = vmul.f32 1.442695, %v695_v31 }
 0x4a7   :  { %v2137_v34 = vpop.eup %2136 }
 0x4a8   :  { %2138 = vpow2.f32 %v698_v33  ;;  %v569_v35 = vsel %vm224_vm8, %v2137_v34, 0.0 }
 0x4ae   :  { %570 = vadd.xlane.f32.xlu1 %v569_v35  ;;  %v2139_v36 = vpop.eup %2138 }
 0x4af   :  { %v703_v37 = vsel %vm224_vm8, %v2139_v36, 0.0 }
 0x4b6   :  { %704 = vadd.xlane.f32.xlu1 %v703_v37  ;;  %v2084_v38 = vpop.permute.xlu0 %2083 }
 0x4b7   :  { %v2085_v39 = vunpack.i.l.bf16 %v2084_v38  ;;  %v2086_v40 = vunpack.i.h.bf16 %v2084_v38 }
 0x4b9   :  { %576 = vrot.lane.b32.xlu2 %v2509_v56, %s2381_s15  ;;  %463 = vmatpush.msrb.mxu3 %v2085_v39 }
 0x4ba   :  { %489 = vmatpush.msrb.mxu1 %v2086_v40 }
 0x4be   :  { %v711_v41 = vpop.permute.xlu0 %710 }
 0x4c6   :  { %v603_v43 = vpop.permute.xlu0 %602 }
 0x4c7   :  { %623 = vmatpush.msra.mxu1 %v603_v43 }
 0x4cf   :  { %736 = vrot.lane.b32.xlu1 %v2513_v58, %s2380_s0 }
 0x4fd   :  { %v437_v44 = vpop.xlane.xlu2 %436 }
 0x4fe   :  { %2140 = vrcp.f32 %v437_v44 }
 0x504   :  { %v2141_v45 = vpop.eup %2140 }
 0x505   :  { %v441_v46 = vmul.f32 %v2141_v45, %v2129_v13  ;;  %v568_v49 = vpop.xlane.xlu1 %567  ;;  %v797_v13 = vld [vmem:[%s2949_s5 + $0x10] sm:$0xff] }
 0x506   :  { %819 = vmatpush.msra.mxu2 %v797_v13 }
 0x507   :  { %1983 = vmatmul.msk.f32.vlgmr.msrb.gmra.mxu1 %vm224_vm8, %v441_v46  ;;  %v883_v46 = vld [vmem:[%s2950_s6 + $0x10] sm:$0xff] }
 0x508   :  { %820 = vmatpush.msra.mxu2 %v796_v14 }
 0x50a   :  { %821 = vmatpush.msra.mxu2 %v795_v15 }
 0x514   :  { %v434_v50 = vpop.xlane.xlu2 %433 }
 0x515   :  { %2142 = vrcp.f32 %v434_v50  ;;  %v881_v50 = vld [vmem:[%s2950_s6] sm:$0xff] }
 0x516   :  { %2144 = vrcp.f32 %v568_v49  ;;  %v882_v49 = vld [vmem:[%s2950_s6 + $0x8] sm:$0xff] }
 0x519   :  { %v702_v51 = vpop.xlane.xlu1 %701 }
 0x51b   :  { %v2143_v52 = vpop.eup %2142 }
 0x51c   :  { %v440_v56 = vmul.f32 %v2143_v52, %v2133_v26  ;;  %v577_v54 = vpop.permute.xlu2 %576  ;;  %v2145_v55 = vpop.eup %2144 }
 0x51d   :  { %597 = vmatpush.msra.mxu3 %v577_v54  ;;  %v574_v57 = vmul.f32 %v2145_v55, %v2131_v16 }
 0x51e   :  { %1982 = vmatmul.msk.f32.vlgmr.msrb.gmra.mxu3 %vm224_vm8, %v440_v56 }
 0x51f   :  { %731 = vmatpush.msrb.mxu3 %v711_v41 }
 0x521   :  { %v571_v58 = vpop.xlane.xlu1 %570 }
 0x522   :  { %2146 = vrcp.f32 %v571_v58 }
 0x523   :  { %2148 = vrcp.f32 %v702_v51 }
 0x526   :  { %1988 = vmatmul.msk.f32.vlgmr.msra.gmra.mxu3 %vm224_vm8, %v574_v57 }
 0x528   :  { %v2147_v59 = vpop.eup %2146 }
 0x529   :  { %v2149_v60 = vpop.eup %2148  ;;  %v575_v62 = vmul.f32 %v2147_v59, %v2137_v34  ;;  %v705_v0 = vpop.xlane.xlu1 %704 }
 0x52a   :  { %v708_v63 = vmul.f32 %v2149_v60, %v2135_v30  ;;  %2150 = vrcp.f32 %v705_v0 }
 0x52b   :  { %1989 = vmatmul.msk.f32.vlgmr.msra.gmra.mxu1 %vm224_vm8, %v575_v62 }
 0x52e   :  { %1994 = vmatmul.msk.f32.vlgmr.msrb.gmra.mxu3 %vm224_vm8, %v708_v63 }
 0x530   :  { %v2151_v1 = vpop.eup %2150 }
 0x531   :  { %v709_v3 = vmul.f32 %v2151_v1, %v2139_v36 }
 0x541   :  { %v737_v4 = vpop.permute.xlu1 %736 }
 0x542   :  { %757 = vmatpush.msrb.mxu1 %v737_v4 }
 0x543   :  { %1995 = vmatmul.msk.f32.vlgmr.msrb.gmra.mxu1 %vm224_vm8, %v709_v3 }
 0x584   :  { %v491_v7 = vpop.f32.mrf.mxu1 }
 0x5a1   :  { %v465_v5 = vpop.f32.mrf.mxu3 }
 0x5a2   :  { %764 = vrot.lane.b32.xlu0 %v465_v5, %s2367_s28 }
 0x5a8   :  { %v625_v9 = vpop.f32.mrf.mxu1 }
 0x5a9   :  { %v599_v6 = vpop.f32.mrf.mxu3 }
 0x5aa   :  { %772 = vrot.lane.b32.xlu2 %v599_v6, %s2960_s16 }
 0x5b1   :  { %v733_v8 = vpop.f32.mrf.mxu3 }
 0x5b2   :  { %766 = vrot.lane.b32.xlu2 %v491_v7, %s2367_s28  ;;  %780 = vrot.lane.b32.xlu0 %v733_v8, %s2958_s18 }
 0x5ba   :  { %774 = vrot.lane.b32.xlu0 %v625_v9, %s2960_s16 }
 0x5c0   :  { %v759_v11 = vpop.f32.mrf.mxu1 }
 0x5c1   :  { %782 = vrot.lane.b32.xlu2 %v759_v11, %s2958_s18 }
 0x604   :  { %v773_v16 = vpop.permute.xlu2 %772 }
 0x60c   :  { %v767_v21 = vpop.permute.xlu2 %766 }
 0x60d   :  { %v787_v23 = vsel %vm224_vm8, %v2581_v47, %v767_v21  ;;  %v941_v21 = vld [vmem:[%s2951_s7 + $0x28] sm:$0xff] }
 0x614   :  { %v765_v17 = vpop.permute.xlu0 %764 }
 0x615   :  { %v786_v18 = vsel %vm224_vm8, %v2577_v42, %v765_v17  ;;  %v2645_v42 = vld [vmem:[%s2954_s10] sm:$0x3f] }
 0x616   :  { %v789_v19 = vsel %vm788_vm9, %v786_v18, %v773_v16  ;;  %v799_v28 = vperm.slane %v2645_v42, 0  ;;  %v875_v3 = vperm.slane %v2645_v42, 1  ;;  %v878_v8 = vperm.slane %v2645_v42, 2 }
 0x61b   :  { %v783_v25 = vpop.permute.xlu2 %782 }
 0x624   :  { %v781_v20 = vpop.permute.xlu0 %780 }
 0x625   :  { %v792_v22 = vsel %vm791_vm10, %v789_v19, %v781_v20  ;;  %v943_v19 = vld [vmem:[%s2951_s7 + $0x38] sm:$0xff]  ;;  %v942_v20 = vld [vmem:[%s2951_s7 + $0x30] sm:$0xff] }
 0x626   :  { %1996 = vmatmul.msk.f32.vlgmr.msra.gmra.mxu2 %vm124_vm0, %v792_v22  ;;  %960 = vmatpush.msra.mxu3 %v943_v19  ;;  %v940_v22 = vld [vmem:[%s2951_s7 + $0x20] sm:$0xff] }
 0x628   :  { %961 = vmatpush.msra.mxu3 %v942_v20 }
 0x62a   :  { %962 = vmatpush.msra.mxu3 %v941_v21 }
 0x62c   :  { %v775_v24 = vpop.permute.xlu0 %774  ;;  %963 = vmatpush.msra.mxu3 %v940_v22 }
 0x62d   :  { %v790_v26 = vsel %vm788_vm9, %v787_v23, %v775_v24  ;;  %v939_v23 = vld [vmem:[%s2951_s7 + $0x18] sm:$0xff]  ;;  %v938_v24 = vld [vmem:[%s2951_s7 + $0x10] sm:$0xff] }
 0x62e   :  { %v793_v27 = vsel %vm791_vm10, %v790_v26, %v783_v25  ;;  %964 = vmatpush.msra.mxu3 %v939_v23  ;;  %v937_v25 = vld [vmem:[%s2951_s7 + $0x8] sm:$0xff]  ;;  %v936_v26 = vld [vmem:[%s2951_s7] sm:$0xff] }
 0x62f   :  { %1997 = vmatmul.msk.f32.gmra.mxu2 %vm124_vm0, %v793_v27  ;;  %v2110_v27 = vld [vmem:[%s2953_s9] ss:$0 sm:$0xff] }
 0x630   :  { %965 = vmatpush.msra.mxu3 %v938_v24 }
 0x632   :  { %966 = vmatpush.msra.mxu3 %v937_v25 }
 0x634   :  { %967 = vmatpush.msra.mxu3 %v936_v26  ;;  %v1021_v26 = vperm.slane %v2645_v42, 4 }
 0x6a9   :  { %v823_v29 = vpop.f32.mrf.mxu2 }
 0x6aa   :  { %v824_v30 = vadd.f32 %v823_v29, %v799_v28 }
 0x6ac   :  { %v829_v31 = vadd.f32 %v824_v30, %v2501_v48 }
 0x6ae   :  { %v831_v47 = vsel %vm124_vm0, %v829_v31, 0.0 }
 0x6af   :  { %832 = vadd.xlane.f32.xlu1 %v831_v47 }
 0x6b2   :  { %v826_v32 = vpop.f32.mrf.mxu2 }
 0x6b3   :  { %v827_v33 = vadd.f32 %v826_v32, %v799_v28 }
 0x6b5   :  { %v830_v34 = vadd.f32 %v827_v33, %v2505_v53  ;;  %v884_v53 = vld [vmem:[%s2950_s6 + $0x18] sm:$0xff] }
 0x6b6   :  { %907 = vmatpush.msrb.mxu0 %v884_v53 }
 0x6b7   :  { %v834_v35 = vsel %vm124_vm0, %v830_v34, 0.0 }
 0x6b8   :  { %835 = vadd.xlane.f32.xlu0 %v834_v35  ;;  %908 = vmatpush.msrb.mxu0 %v883_v46 }
 0x6ba   :  { %909 = vmatpush.msrb.mxu0 %v882_v49 }
 0x6bc   :  { %910 = vmatpush.msrb.mxu0 %v881_v50  ;;  %v944_v50 = vperm.slane %v2645_v42, 3 }
 0x722   :  { %v833_v36 = vpop.xlane.xlu1 %832 }
 0x723   :  { %v837_v37 = vmul.f32 %v833_v36, %v2481_v10 }
 0x725   :  { %v839_v38 = vsub.f32 %v829_v31, %v837_v37 }
 0x727   :  { %v841_v39 = vmul.f32 %v839_v38, %v839_v38 }
 0x729   :  { %v843_v40 = vsel %vm124_vm0, %v841_v39, 0.0 }
 0x72a   :  { %844 = vadd.xlane.f32.xlu2 %v843_v40 }
 0x72b   :  { %v836_v41 = vpop.xlane.xlu0 %835 }
 0x72c   :  { %v838_v48 = vmul.f32 %v836_v41, %v2481_v10 }
 0x72e   :  { %v840_v43 = vsub.f32 %v830_v34, %v838_v48 }
 0x730   :  { %v842_v44 = vmul.f32 %v840_v43, %v840_v43 }
 0x732   :  { %v846_v45 = vsel %vm124_vm0, %v842_v44, 0.0 }
 0x733   :  { %847 = vadd.xlane.f32.xlu1 %v846_v45 }
 0x79d   :  { %v845_v51 = vpop.xlane.xlu2 %844 }
 0x79e   :  { %v849_v52 = vmul.f32 %v845_v51, %v2481_v10 }
 0x7a0   :  { %v851_v56 = vadd.f32 1e-12, %v849_v52 }
 0x7a2   :  { %2152 = vrsqrt.f32 %v851_v56  ;;  %vm859_vm12 = vweird.f32 %v851_v56 }
 0x7a6   :  { %v848_v54 = vpop.xlane.xlu1 %847 }
 0x7a7   :  { %v850_v55 = vmul.f32 %v848_v54, %v2481_v10 }
 0x7a8   :  { %v2153_v58 = vpop.eup %2152 }
 0x7a9   :  { %v854_v57 = vmul.f32 %v2153_v58, %v851_v56  ;;  %v852_v59 = vadd.f32 1e-12, %v850_v55  ;;  %vm860_vm11 = vweird.f32 %v2153_v58 }
 0x7aa   :  { %vm861_vm13 = vmor %vm859_vm12, %vm860_vm11 }
 0x7ab   :  { %v855_v60 = vmul.f32 %v2153_v58, %v854_v57  ;;  %2154 = vrsqrt.f32 %v852_v59  ;;  %vm869_vm15 = vweird.f32 %v852_v59 }
 0x7ad   :  { %v856_v62 = vmul.f32 0.5, %v855_v60 }
 0x7af   :  { %v857_v63 = vsub.f32 1.5, %v856_v62 }
 0x7b1   :  { %v2155_v0 = vpop.eup %2154  ;;  %v858_v1 = vmul.f32 %v2153_v58, %v857_v63 }
 0x7b2   :  { %v864_v4 = vmul.f32 %v2155_v0, %v852_v59  ;;  %vm870_vm14 = vweird.f32 %v2155_v0 }
 0x7b3   :  { %v862_v5 = vsel %vm861_vm13, %v2153_v58, %v858_v1  ;;  %vm871_vm1 = vmor %vm869_vm15, %vm870_vm14 }
 0x7b4   :  { %v873_v6 = vmul.f32 %v862_v5, %v839_v38  ;;  %v865_v7 = vmul.f32 %v2155_v0, %v864_v4 }
 0x7b6   :  { %v876_v9 = vmul.f32 %v875_v3, %v873_v6  ;;  %v866_v11 = vmul.f32 0.5, %v865_v7 }
 0x7b8   :  { %v867_v12 = vsub.f32 1.5, %v866_v11  ;;  %v879_v13 = vadd.f32 %v878_v8, %v876_v9  ;;  %v2004_v9 = vld [vmem:[%s2948_s4 + $0x30] sm:$0xff]  ;;  %v2003_v11 = vld [vmem:[%s2948_s4 + $0x28] sm:$0xff] }
 0x7ba   :  { %v868_v14 = vmul.f32 %v2155_v0, %v867_v12  ;;  %1998 = vmatmul.msk.f32.vlgmr.msrb.gmra.mxu0 %vm124_vm0, %v879_v13  ;;  %v2002_v12 = vld [vmem:[%s2948_s4 + $0x20] sm:$0xff] }
 0x7bc   :  { %v872_v15 = vsel %vm871_vm1, %v2155_v0, %v868_v14 }
 0x7bd   :  { %v874_v16 = vmul.f32 %v872_v15, %v840_v43 }
 0x7bf   :  { %v877_v17 = vmul.f32 %v875_v3, %v874_v16 }
 0x7c1   :  { %v880_v18 = vadd.f32 %v878_v8, %v877_v17  ;;  %v2005_v8 = vld [vmem:[%s2948_s4 + $0x38] sm:$0xff]  ;;  %s2962_s4 = smov 16  }
 0x7c2   :  { %1055 = vmatpush.msra.mxu1 %v2005_v8 }
 0x7c3   :  { %1999 = vmatmul.msk.f32.gmra.mxu0 %vm124_vm0, %v880_v18 }
 0x7c4   :  { %1056 = vmatpush.msra.mxu1 %v2004_v9 }
 0x7c6   :  { %1057 = vmatpush.msra.mxu1 %v2003_v11 }
 0x7c8   :  { %1058 = vmatpush.msra.mxu1 %v2002_v12 }
 0x837   :  { %v912_v28 = vpop.f32.mrf.mxu0 }
 0x838   :  { %v913_v29 = vadd.f32 %v2110_v27, %v912_v28 }
 0x83a   :  { %v918_v30 = vmul.f32 %v913_v29, %v913_v29 }
 0x83c   :  { %v920_v31 = vmul.f32 %v918_v30, %v913_v29 }
 0x83e   :  { %v922_v47 = vmul.f32 0.044715, %v920_v31  ;;  %v1024_v31 = vperm.slane %v2645_v42, 5  ;;  %v2111_v42 = vld [vmem:[#allocation10 + $0x1] ss:$0 sm:$0xff] }
 0x840   :  { %v924_v32 = vadd.f32 %v922_v47, %v913_v29  ;;  %v915_v33 = vpop.f32.mrf.mxu0 }
 0x841   :  { %v916_v34 = vadd.f32 %v2110_v27, %v915_v33 }
 0x842   :  { %v926_v35 = vmul.f32 0.7978846, %v924_v32 }
 0x843   :  { %v919_v36 = vmul.f32 %v916_v34, %v916_v34 }
 0x844   :  { %2156 = vtanh.f32 %v926_v35 }
 0x845   :  { %v921_v37 = vmul.f32 %v919_v36, %v916_v34 }
 0x847   :  { %v923_v38 = vmul.f32 0.044715, %v921_v37 }
 0x849   :  { %v925_v39 = vadd.f32 %v923_v38, %v916_v34 }
 0x84a   :  { %v2157_v40 = vpop.eup %2156 }
 0x84b   :  { %v930_v41 = vadd.f32 1.0, %v2157_v40  ;;  %v927_v48 = vmul.f32 0.7978846, %v925_v39 }
 0x84d   :  { %v932_v43 = vmul.f32 0.5, %v930_v41  ;;  %2158 = vtanh.f32 %v927_v48 }
 0x84f   :  { %v934_v44 = vmul.f32 %v932_v43, %v913_v29 }
 0x851   :  { %2000 = vmatmul.msk.f32.vlgmr.msra.gmra.mxu3 %vm945_vm2, %v934_v44 }
 0x853   :  { %v2159_v45 = vpop.eup %2158 }
 0x854   :  { %v931_v53 = vadd.f32 1.0, %v2159_v45 }
 0x856   :  { %v933_v46 = vmul.f32 0.5, %v931_v53 }
 0x858   :  { %v935_v49 = vmul.f32 %v933_v46, %v916_v34 }
 0x85a   :  { %2001 = vmatmul.msk.f32.gmra.mxu3 %vm945_vm2, %v935_v49 }
 0x8d4   :  { %v969_v51 = vpop.f32.mrf.mxu3 }
 0x8d5   :  { %v970_v52 = vadd.f32 %v969_v51, %v944_v50 }
 0x8d7   :  { %v975_v56 = vadd.f32 %v970_v52, %v879_v13 }
 0x8d9   :  { %v977_v54 = vsel %vm124_vm0, %v975_v56, 0.0 }
 0x8da   :  { %978 = vadd.xlane.f32.xlu2 %v977_v54 }
 0x8dd   :  { %v972_v55 = vpop.f32.mrf.mxu3 }
 0x8de   :  { %v973_v58 = vadd.f32 %v972_v55, %v944_v50 }
 0x8e0   :  { %v976_v57 = vadd.f32 %v973_v58, %v880_v18 }
 0x8e2   :  { %v980_v59 = vsel %vm124_vm0, %v976_v57, 0.0 }
 0x8e3   :  { %981 = vadd.xlane.f32.xlu0 %v980_v59 }
 0x94d   :  { %v979_v60 = vpop.xlane.xlu2 %978 }
 0x94e   :  { %v983_v62 = vmul.f32 %v979_v60, %v2481_v10 }
 0x950   :  { %v985_v63 = vsub.f32 %v975_v56, %v983_v62 }
 0x952   :  { %v987_v0 = vmul.f32 %v985_v63, %v985_v63 }
 0x954   :  { %v989_v1 = vsel %vm124_vm0, %v987_v0, 0.0 }
 0x955   :  { %990 = vadd.xlane.f32.xlu1 %v989_v1 }
 0x956   :  { %v982_v3 = vpop.xlane.xlu0 %981 }
 0x957   :  { %v984_v4 = vmul.f32 %v982_v3, %v2481_v10 }
 0x959   :  { %v986_v5 = vsub.f32 %v976_v57, %v984_v4 }
 0x95b   :  { %v988_v6 = vmul.f32 %v986_v5, %v986_v5 }
 0x95d   :  { %v992_v7 = vsel %vm124_vm0, %v988_v6, 0.0 }
 0x95e   :  { %993 = vadd.xlane.f32.xlu2 %v992_v7 }
 0x9c8   :  { %v991_v13 = vpop.xlane.xlu1 %990 }
 0x9c9   :  { %v995_v14 = vmul.f32 %v991_v13, %v2481_v10 }
 0x9cb   :  { %v997_v15 = vadd.f32 1e-12, %v995_v14 }
 0x9cd   :  { %2160 = vrsqrt.f32 %v997_v15  ;;  %vm1005_vm4 = vweird.f32 %v997_v15 }
 0x9d1   :  { %v994_v16 = vpop.xlane.xlu2 %993 }
 0x9d2   :  { %v996_v17 = vmul.f32 %v994_v16, %v2481_v10 }
 0x9d3   :  { %v2161_v18 = vpop.eup %2160 }
 0x9d4   :  { %v1000_v19 = vmul.f32 %v2161_v18, %v997_v15  ;;  %v998_v20 = vadd.f32 1e-12, %v996_v17  ;;  %vm1006_vm3 = vweird.f32 %v2161_v18 }
 0x9d5   :  { %vm1007_vm5 = vmor %vm1005_vm4, %vm1006_vm3 }
 0x9d6   :  { %v1001_v21 = vmul.f32 %v2161_v18, %v1000_v19  ;;  %2162 = vrsqrt.f32 %v998_v20  ;;  %vm1015_vm7 = vweird.f32 %v998_v20 }
 0x9d8   :  { %v1002_v22 = vmul.f32 0.5, %v1001_v21 }
 0x9da   :  { %v1003_v23 = vsub.f32 1.5, %v1002_v22 }
 0x9dc   :  { %v2163_v24 = vpop.eup %2162  ;;  %v1004_v25 = vmul.f32 %v2161_v18, %v1003_v23 }
 0x9dd   :  { %v1010_v27 = vmul.f32 %v2163_v24, %v998_v20  ;;  %vm1016_vm6 = vweird.f32 %v2163_v24 }
 0x9de   :  { %v1008_v28 = vsel %vm1007_vm5, %v2161_v18, %v1004_v25  ;;  %vm1017_vm11 = vmor %vm1015_vm7, %vm1016_vm6 }
 0x9df   :  { %v1019_v29 = vmul.f32 %v1008_v28, %v985_v63  ;;  %v1011_v30 = vmul.f32 %v2163_v24, %v1010_v27  ;;  %v2208_v27 = vld [vmem:[#allocation5] ss:$0 sm:$0xff] }
 0x9e1   :  { %v1022_v47 = vmul.f32 %v1021_v26, %v1019_v29  ;;  %v1012_v32 = vmul.f32 0.5, %v1011_v30 }
 0x9e3   :  { %v1013_v33 = vsub.f32 1.5, %v1012_v32  ;;  %v2726_v34 = vadd.f32 %v1024_v31, %v1022_v47 }
 0x9e5   :  { %v1014_v35 = vmul.f32 %v2163_v24, %v1013_v33  ;;  %2006 = vmatmul.msk.f32.vlgmr.msra.gmra.mxu1 %vm124_vm0, %v2726_v34 }
 0x9e7   :  { %v1018_v36 = vsel %vm1017_vm11, %v2163_v24, %v1014_v35 }
 0x9e8   :  { %v1020_v37 = vmul.f32 %v1018_v36, %v986_v5 }
 0x9ea   :  { %v1023_v38 = vmul.f32 %v1021_v26, %v1020_v37 }
 0x9ec   :  { %v2730_v39 = vadd.f32 %v1024_v31, %v1023_v38 }
 0x9ee   :  { %2007 = vmatmul.msk.f32.gmra.mxu1 %vm124_vm0, %v2730_v39 }
 0xa62   :  { %v1060_v40 = vpop.f32.mrf.mxu1 }
 0xa63   :  { %v2734_v41 = vadd.f32 %v2111_v42, %v1060_v40 }
 0xa65   :  { %1067 = vrot.lane.b32.xlu0 %v2734_v41, %s2371_s23 }
 0xa6b   :  { %v1063_v48 = vpop.f32.mrf.mxu1 }
 0xa6c   :  { %v2738_v43 = vadd.f32 %v2111_v42, %v1063_v48 }
 0xa6d   :  { %1198 = vrot.lane.b32.xlu0 %v2734_v41, %s2375_s26 }
 0xa6e   :  { %1228 = vrot.lane.b32.xlu2 %v2738_v43, %s2373_s24  ;;  %1094 = vrot.lane.b32.xlu1 %v2738_v43, %s2371_s23  ;;  %v2087_v31 = vpack.i.bf16 %v2738_v43, %v2734_v41  ;;  %s2963_s23 = smov 24  }
 0xa75   :  { %1226 = vrot.lane.b32.xlu0 %v2738_v43, %s2375_s26 }
 0xa76   :  { %1362 = vrot.lane.b32.xlu2 %v2738_v43, %s2374_s25  ;;  %1200 = vrot.lane.b32.xlu1 %v2734_v41, %s2373_s24 }
 0xa7d   :  { %1334 = vrot.lane.b32.xlu0 %v2734_v41, %s2374_s25 }
 0xa7e   :  { %1332 = vrot.lane.b32.xlu2 %v2734_v41, %s2376_s27  ;;  %1360 = vrot.lane.b32.xlu1 %v2738_v43, %s2376_s27 }
 0xa85   :  { %1494 = vrot.lane.b32.xlu0 %v2738_v43, %s2377_s29 }
 0xa86   :  { %1468 = vrot.lane.b32.xlu2 %v2734_v41, %s2378_s30  ;;  %1496 = vrot.lane.b32.xlu1 %v2738_v43, %s2378_s30 }
 0xa8e   :  { %1466 = vrot.lane.b32.xlu1 %v2734_v41, %s2377_s29 }
 0xac8   :  { %v1229_v44 = vpop.permute.xlu2 %1228 }
 0xac9   :  { %2016 = vmatpush.xpose.msk.msrb.mxu3 %vm224_vm8, %v1229_v44 }
 0xad0   :  { %v1363_v45 = vpop.permute.xlu2 %1362 }
 0xad1   :  { %2022 = vmatpush.xpose.msk.msra.mxu3 %vm224_vm8, %v1363_v45 }
 0xad7   :  { %v1068_v53 = vpop.permute.xlu0 %1067 }
 0xad8   :  { %2008 = vmatpush.xpose.msk.msrb.mxu2 %vm224_vm8, %v1068_v53  ;;  %v1333_v50 = vpop.permute.xlu2 %1332 }
 0xadb   :  { %2009 = vmatmul.msk.f32.vlgmr.msrb.gmra.mxu2 %vm224_vm8, %v2734_v41 }
 0xadf   :  { %v1199_v46 = vpop.permute.xlu0 %1198 }
 0xae0   :  { %v1095_v49 = vpop.permute.xlu1 %1094  ;;  %v1469_v54 = vpop.permute.xlu2 %1468 }
 0xae1   :  { %2010 = vmatpush.xpose.msk.msra.mxu0 %vm224_vm8, %v1095_v49 }
 0xae4   :  { %2011 = vmatmul.msk.f32.vlgmr.msra.gmra.mxu0 %vm224_vm8, %v2738_v43 }
 0xae7   :  { %v1227_v51 = vpop.permute.xlu0 %1226 }
 0xae8   :  { %v1201_v52 = vpop.permute.xlu1 %1200  ;;  %2017 = vmatmul.msk.f32.vlgmr.msrb.gmra.mxu3 %vm224_vm8, %v1227_v51 }
 0xae9   :  { %2014 = vmatpush.xpose.msk.msrb.mxu0 %vm224_vm8, %v1201_v52 }
 0xaec   :  { %2015 = vmatmul.msk.f32.vlgmr.msrb.gmra.mxu0 %vm224_vm8, %v1199_v46 }
 0xaef   :  { %v1335_v56 = vpop.permute.xlu0 %1334 }
 0xaf0   :  { %v1361_v55 = vpop.permute.xlu1 %1360  ;;  %2020 = vmatpush.xpose.msk.msra.mxu0 %vm224_vm8, %v1335_v56 }
 0xaf1   :  { %2023 = vmatmul.msk.f32.vlgmr.msra.gmra.mxu3 %vm224_vm8, %v1361_v55 }
 0xaf4   :  { %2026 = vmatpush.xpose.msk.msrb.mxu0 %vm224_vm8, %v1469_v54 }
 0xaf5   :  { %2021 = vmatmul.msk.f32.vlgmr.msra.gmra.mxu0 %vm224_vm8, %v1333_v50 }
 0xaf7   :  { %v1495_v57 = vpop.permute.xlu0 %1494 }
 0xaf8   :  { %v1497_v58 = vpop.permute.xlu1 %1496 }
 0xaf9   :  { %2028 = vmatpush.xpose.msk.msrb.mxu3 %vm224_vm8, %v1497_v58 }
 0xafc   :  { %2029 = vmatmul.msk.f32.vlgmr.msrb.gmra.mxu3 %vm224_vm8, %v1495_v57 }
 0xb00   :  { %v1467_v59 = vpop.permute.xlu1 %1466 }
 0xb01   :  { %2027 = vmatmul.msk.f32.vlgmr.msrb.gmra.mxu0 %vm224_vm8, %v1467_v59 }
 0xb5e   :  { %v1090_v60 = vpop.f32.mrf.mxu2 }
 0xb5f   :  { %v1120_v62 = vmul.f32 0.35355338, %v1090_v60 }
 0xb61   :  { %v1117_v63 = vpop.f32.mrf.mxu0  ;;  %v1122_v0 = vadd.f32 %v2523_v61, %v1120_v62 }
 0xb62   :  { %v1121_v1 = vmul.f32 0.35355338, %v1117_v63 }
 0xb63   :  { %v1124_v3 = vsel %vm224_vm8, %v1122_v0, -inf }
 0xb64   :  { %1125 = vmax.xlane.f32.xlu0 %v1124_v3  ;;  %v1123_v4 = vadd.f32 %v2527_v2, %v1121_v1 }
 0xb66   :  { %v1127_v5 = vsel %vm224_vm8, %v1123_v4, -inf }
 0xb67   :  { %1128 = vmax.xlane.f32.xlu2 %v1127_v5 }
 0xb69   :  { %v1223_v6 = vpop.f32.mrf.mxu0 }
 0xb6a   :  { %v1254_v7 = vmul.f32 0.35355338, %v1223_v6 }
 0xb6b   :  { %v1251_v8 = vpop.f32.mrf.mxu3 }
 0xb6c   :  { %v1255_v9 = vmul.f32 0.35355338, %v1251_v8  ;;  %v1256_v11 = vadd.f32 %v2523_v61, %v1254_v7 }
 0xb6e   :  { %v1258_v12 = vsel %vm224_vm8, %v1256_v11, -inf  ;;  %v1257_v13 = vadd.f32 %v2527_v2, %v1255_v9 }
 0xb6f   :  { %1259 = vmax.xlane.f32.xlu1 %v1258_v12 }
 0xb70   :  { %v1261_v14 = vsel %vm224_vm8, %v1257_v13, -inf }
 0xb71   :  { %1262 = vmax.xlane.f32.xlu0 %v1261_v14 }
 0xb72   :  { %v1357_v15 = vpop.f32.mrf.mxu0 }
 0xb73   :  { %v1388_v16 = vmul.f32 0.35355338, %v1357_v15 }
 0xb74   :  { %v1385_v17 = vpop.f32.mrf.mxu3 }
 0xb75   :  { %v1390_v18 = vadd.f32 %v2523_v61, %v1388_v16  ;;  %v1389_v19 = vmul.f32 0.35355338, %v1385_v17 }
 0xb77   :  { %v1392_v20 = vsel %vm224_vm8, %v1390_v18, -inf  ;;  %v1391_v21 = vadd.f32 %v2527_v2, %v1389_v19 }
 0xb78   :  { %1393 = vmax.xlane.f32.xlu2 %v1392_v20 }
 0xb79   :  { %v1395_v22 = vsel %vm224_vm8, %v1391_v21, -inf }
 0xb7a   :  { %1396 = vmax.xlane.f32.xlu1 %v1395_v22 }
 0xb7e   :  { %v1491_v23 = vpop.f32.mrf.mxu0 }
 0xb7f   :  { %v1522_v24 = vmul.f32 0.35355338, %v1491_v23  ;;  %v1519_v25 = vpop.f32.mrf.mxu3 }
 0xb80   :  { %v1523_v26 = vmul.f32 0.35355338, %v1519_v25 }
 0xb81   :  { %v1524_v28 = vadd.f32 %v2208_v27, %v1522_v24 }
 0xb82   :  { %v1525_v29 = vadd.f32 %v2527_v2, %v1523_v26 }
 0xb83   :  { %v1526_v30 = vsel %vm224_vm8, %v1524_v28, -inf }
 0xb84   :  { %1527 = vmax.xlane.f32.xlu0 %v1526_v30  ;;  %v1529_v61 = vsel %vm224_vm8, %v1525_v29, -inf }
 0xb85   :  { %1530 = vmax.xlane.f32.xlu2 %v1529_v61 }
 0xb93   :  { %2088 = vrot.lane.b32.xlu1 %v2087_v31, %s2372_s3 }
 0xb98   :  { %2093 = vrot.lane.b32.xlu0 %v2087_v31, %s2379_s14 }
 0xbd7   :  { %v1126_v47 = vpop.xlane.xlu0 %1125 }
 0xbd8   :  { %v1130_v32 = vsub.f32 %v1122_v0, %v1126_v47 }
 0xbda   :  { %v1132_v33 = vmul.f32 1.442695, %v1130_v32  ;;  %v1129_v35 = vpop.xlane.xlu2 %1128 }
 0xbdb   :  { %v1131_v36 = vsub.f32 %v1123_v4, %v1129_v35 }
 0xbdc   :  { %2164 = vpow2.f32 %v1132_v33 }
 0xbdd   :  { %v1134_v2 = vmul.f32 1.442695, %v1131_v36 }
 0xbdf   :  { %2166 = vpow2.f32 %v1134_v2 }
 0xbe2   :  { %v2803_v37 = vpop.eup %2164  ;;  %v1260_v38 = vpop.xlane.xlu1 %1259 }
 0xbe3   :  { %v1264_v42 = vsub.f32 %v1256_v11, %v1260_v38  ;;  %v1136_v40 = vsel %vm224_vm8, %v2803_v37, 0.0 }
 0xbe4   :  { %1137 = vadd.xlane.f32.xlu1 %v1136_v40  ;;  %v1263_v41 = vpop.xlane.xlu0 %1262 }
 0xbe5   :  { %v2167_v48 = vpop.eup %2166  ;;  %v1266_v43 = vmul.f32 1.442695, %v1264_v42  ;;  %v1265_v44 = vsub.f32 %v1257_v13, %v1263_v41 }
 0xbe6   :  { %v1139_v45 = vsel %vm224_vm8, %v2167_v48, 0.0 }
 0xbe7   :  { %2168 = vpow2.f32 %v1266_v43  ;;  %v1268_v53 = vmul.f32 1.442695, %v1265_v44  ;;  %1140 = vadd.xlane.f32.xlu0 %v1139_v45 }
 0xbe9   :  { %2170 = vpow2.f32 %v1268_v53 }
 0xbeb   :  { %v1394_v49 = vpop.xlane.xlu2 %1393 }
 0xbec   :  { %v1398_v54 = vsub.f32 %v1390_v18, %v1394_v49 }
 0xbed   :  { %v2169_v46 = vpop.eup %2168  ;;  %v1397_v50 = vpop.xlane.xlu1 %1396 }
 0xbee   :  { %v1399_v51 = vsub.f32 %v1391_v21, %v1397_v50  ;;  %v1270_v52 = vsel %vm224_vm8, %v2169_v46, 0.0  ;;  %v1400_v57 = vmul.f32 1.442695, %v1398_v54 }
 0xbef   :  { %v2171_v56 = vpop.eup %2170  ;;  %1271 = vadd.xlane.f32.xlu2 %v1270_v52 }
 0xbf0   :  { %v1402_v55 = vmul.f32 1.442695, %v1399_v51  ;;  %v1273_v58 = vsel %vm224_vm8, %v2171_v56, 0.0 }
 0xbf1   :  { %1274 = vadd.xlane.f32.xlu0 %v1273_v58  ;;  %v2035_v58 = vld [vmem:[%s2949_s5 + $0x30] sm:$0xff] }
 0xbf2   :  { %2172 = vpow2.f32 %v1402_v55  ;;  %v2036_v55 = vld [vmem:[%s2949_s5 + $0x38] sm:$0xff] }
 0xbf3   :  { %2174 = vpow2.f32 %v1400_v57  ;;  %1656 = vmatpush.msra.mxu0 %v2036_v55  ;;  %v2034_v57 = vld [vmem:[%s2949_s5 + $0x28] sm:$0xff] }
 0xbf5   :  { %1657 = vmatpush.msra.mxu0 %v2035_v58 }
 0xbf7   :  { %v1528_v59 = vpop.xlane.xlu0 %1527  ;;  %1658 = vmatpush.msra.mxu0 %v2034_v57 }
 0xbf8   :  { %v2173_v60 = vpop.eup %2172  ;;  %v1532_v62 = vsub.f32 %v1524_v28, %v1528_v59  ;;  %v1531_v1 = vpop.xlane.xlu2 %1530  ;;  %v2033_v59 = vld [vmem:[%s2949_s5 + $0x20] sm:$0xff] }
 0xbf9   :  { %v1407_v63 = vsel %vm224_vm8, %v2173_v60, 0.0  ;;  %v2175_v3 = vpop.eup %2174  ;;  %v1533_v4 = vsub.f32 %v1525_v29, %v1531_v1  ;;  %1659 = vmatpush.msra.mxu0 %v2033_v59 }
 0xbfa   :  { %1408 = vadd.xlane.f32.xlu2 %v1407_v63  ;;  %v1534_v0 = vmul.f32 1.442695, %v1532_v62  ;;  %v1404_v5 = vsel %vm224_vm8, %v2175_v3, 0.0 }
 0xbfb   :  { %v1536_v6 = vmul.f32 1.442695, %v1533_v4 }
 0xbfc   :  { %2176 = vpow2.f32 %v1534_v0 }
 0xbfd   :  { %2098 = vrot.lane.b32.xlu1 %v2087_v31, %s2381_s15  ;;  %2178 = vpow2.f32 %v1536_v6 }
 0xc02   :  { %1405 = vadd.xlane.f32.xlu2 %v1404_v5  ;;  %v2177_v8 = vpop.eup %2176 }
 0xc03   :  { %v1538_v12 = vsel %vm224_vm8, %v2177_v8, 0.0  ;;  %v2179_v16 = vpop.eup %2178 }
 0xc04   :  { %v1541_v17 = vsel %vm224_vm8, %v2179_v16, 0.0 }
 0xc05   :  { %v2089_v7 = vpop.permute.xlu1 %2088  ;;  %2103 = vrot.lane.b32.xlu0 %v2087_v31, %s2380_s0 }
 0xc06   :  { %v2091_v9 = vunpack.i.h.bf16 %v2089_v7  ;;  %v2090_v11 = vunpack.i.l.bf16 %v2089_v7 }
 0xc08   :  { %1167 = vmatpush.msrb.mxu1 %v2090_v11  ;;  %1193 = vmatpush.msra.mxu2 %v2091_v9  ;;  %v2854_v11 = vld [vmem:[%s2954_s10 + $0x8] sm:$0x3f] }
 0xc0a   :  { %1539 = vadd.xlane.f32.xlu2 %v1538_v12  ;;  %v2094_v13 = vpop.permute.xlu0 %2093  ;;  %v1637_v12 = vperm.slane %v2854_v11, 0 }
 0xc0b   :  { %v2096_v14 = vunpack.i.h.bf16 %v2094_v13  ;;  %v2095_v15 = vunpack.i.l.bf16 %v2094_v13 }
 0xc0d   :  { %1301 = vmatpush.msra.mxu1 %v2095_v15  ;;  %1327 = vmatpush.msrb.mxu2 %v2096_v14 }
 0xc12   :  { %1542 = vadd.xlane.f32.xlu2 %v1541_v17 }
 0xc57   :  { %v1138_v18 = vpop.xlane.xlu1 %1137 }
 0xc58   :  { %2180 = vrcp.f32 %v1138_v18 }
 0xc5a   :  { %v1141_v19 = vpop.xlane.xlu0 %1140 }
 0xc5b   :  { %2182 = vrcp.f32 %v1141_v19 }
 0xc5e   :  { %v2181_v20 = vpop.eup %2180 }
 0xc5f   :  { %v1144_v21 = vmul.f32 %v2181_v20, %v2803_v37 }
 0xc61   :  { %v2183_v22 = vpop.eup %2182  ;;  %2012 = vmatmul.msk.f32.vlgmr.msrb.gmra.mxu1 %vm224_vm8, %v1144_v21 }
 0xc62   :  { %v1145_v23 = vmul.f32 %v2183_v22, %v2167_v48  ;;  %v1272_v24 = vpop.xlane.xlu2 %1271 }
 0xc63   :  { %2184 = vrcp.f32 %v1272_v24 }
 0xc64   :  { %2013 = vmatmul.msk.f32.vlgmr.msra.gmra.mxu2 %vm224_vm8, %v1145_v23  ;;  %v1275_v25 = vpop.xlane.xlu0 %1274 }
 0xc65   :  { %2186 = vrcp.f32 %v1275_v25 }
 0xc69   :  { %v2185_v26 = vpop.eup %2184 }
 0xc6a   :  { %v1278_v27 = vmul.f32 %v2185_v26, %v2169_v46 }
 0xc6b   :  { %v2187_v28 = vpop.eup %2186 }
 0xc6c   :  { %v1279_v29 = vmul.f32 %v2187_v28, %v2171_v56  ;;  %2018 = vmatmul.msk.f32.vlgmr.msra.gmra.mxu1 %vm224_vm8, %v1278_v27 }
 0xc6d   :  { %v1409_v30 = vpop.xlane.xlu2 %1408 }
 0xc6e   :  { %2188 = vrcp.f32 %v1409_v30  ;;  %2019 = vmatmul.msk.f32.vlgmr.msrb.gmra.mxu2 %vm224_vm8, %v1279_v29  ;;  %v2041_v30 = vld [vmem:[%s2950_s6 + $0x30] sm:$0xff] }
 0xc6f   :  { %v2099_v61 = vpop.permute.xlu1 %2098 }
 0xc70   :  { %v2101_v31 = vunpack.i.h.bf16 %v2099_v61  ;;  %v2100_v47 = vunpack.i.l.bf16 %v2099_v61  ;;  %v2040_v61 = vld [vmem:[%s2950_s6 + $0x28] sm:$0xff] }
 0xc72   :  { %1435 = vmatpush.msrb.mxu1 %v2100_v47  ;;  %1461 = vmatpush.msra.mxu2 %v2101_v31  ;;  %v2039_v31 = vld [vmem:[%s2950_s6 + $0x20] sm:$0xff] }
 0xc74   :  { %v2189_v32 = vpop.eup %2188 }
 0xc75   :  { %v1413_v33 = vmul.f32 %v2189_v32, %v2173_v60  ;;  %v1406_v35 = vpop.xlane.xlu2 %1405 }
 0xc76   :  { %2190 = vrcp.f32 %v1406_v35 }
 0xc77   :  { %v2104_v36 = vpop.permute.xlu0 %2103  ;;  %2025 = vmatmul.msk.f32.vlgmr.msra.gmra.mxu2 %vm224_vm8, %v1413_v33 }
 0xc78   :  { %v2106_v2 = vunpack.i.h.bf16 %v2104_v36  ;;  %v2105_v37 = vunpack.i.l.bf16 %v2104_v36 }
 0xc7a   :  { %1569 = vmatpush.msra.mxu1 %v2105_v37  ;;  %1595 = vmatpush.msrb.mxu2 %v2106_v2 }
 0xc7c   :  { %v2191_v38 = vpop.eup %2190 }
 0xc7d   :  { %v1412_v42 = vmul.f32 %v2191_v38, %v2175_v3  ;;  %v1540_v40 = vpop.xlane.xlu2 %1539 }
 0xc7e   :  { %2192 = vrcp.f32 %v1540_v40 }
 0xc7f   :  { %2024 = vmatmul.msk.f32.vlgmr.msrb.gmra.mxu1 %vm224_vm8, %v1412_v42 }
 0xc84   :  { %v2193_v41 = vpop.eup %2192 }
 0xc85   :  { %v1546_v48 = vmul.f32 %v2193_v41, %v2177_v8  ;;  %v1543_v43 = vpop.xlane.xlu2 %1542 }
 0xc86   :  { %2194 = vrcp.f32 %v1543_v43  ;;  %v1713_v43 = vperm.slane %v2854_v11, 1 }
 0xc87   :  { %2030 = vmatmul.msk.f32.vlgmr.msra.gmra.mxu1 %vm224_vm8, %v1546_v48 }
 0xc8c   :  { %v2195_v44 = vpop.eup %2194 }
 0xc8d   :  { %v1547_v45 = vmul.f32 %v2195_v44, %v2179_v16 }
 0xc8f   :  { %2031 = vmatmul.msk.f32.vlgmr.msrb.gmra.mxu2 %vm224_vm8, %v1547_v45 }
 0xcde   :  { %v1169_v53 = vpop.f32.mrf.mxu1 }
 0xce7   :  { %v1195_v46 = vpop.f32.mrf.mxu2 }
 0xce9   :  { %v1303_v49 = vpop.f32.mrf.mxu1 }
 0xcea   :  { %1602 = vrot.lane.b32.xlu1 %v1303_v49, %s2367_s28 }
 0xcf1   :  { %v1329_v50 = vpop.f32.mrf.mxu2 }
 0xcf2   :  { %1604 = vrot.lane.b32.xlu1 %v1329_v50, %s2367_s28 }
 0xcfa   :  { %v1463_v56 = vpop.f32.mrf.mxu2 }
 0xcfc   :  { %v1437_v51 = vpop.f32.mrf.mxu1 }
 0xcfd   :  { %1610 = vrot.lane.b32.xlu2 %v1437_v51, %s2962_s4 }
 0xd04   :  { %v1571_v52 = vpop.f32.mrf.mxu1 }
 0xd05   :  { %1618 = vrot.lane.b32.xlu0 %v1571_v52, %s2963_s23 }
 0xd0d   :  { %1612 = vrot.lane.b32.xlu0 %v1463_v56, %s2962_s4 }
 0xd12   :  { %v1597_v54 = vpop.f32.mrf.mxu2 }
 0xd13   :  { %1620 = vrot.lane.b32.xlu1 %v1597_v54, %s2963_s23 }
 0xd57   :  { %v1611_v63 = vpop.permute.xlu2 %1610 }
 0xd5c   :  { %v1603_v60 = vpop.permute.xlu1 %1602 }
 0xd5d   :  { %v1624_v62 = vsel %vm224_vm8, %v1169_v53, %v1603_v60  ;;  %v1716_v53 = vperm.slane %v2854_v11, 2 }
 0xd5e   :  { %v1626_v0 = vsel %vm788_vm9, %v1624_v62, %v1611_v63  ;;  %v2053_v62 = vld [vmem:[%s2951_s7 + $0x78] sm:$0xff]  ;;  %v2052_v63 = vld [vmem:[%s2951_s7 + $0x70] sm:$0xff] }
 0xd5f   :  { %1800 = vmatpush.msrb.mxu1 %v2053_v62  ;;  %v1861_v62 = vperm.slane %v2854_v11, 4 }
 0xd61   :  { %1801 = vmatpush.msrb.mxu1 %v2052_v63 }
 0xd64   :  { %v1605_v4 = vpop.permute.xlu1 %1604 }
 0xd65   :  { %v1625_v6 = vsel %vm224_vm8, %v1195_v46, %v1605_v4  ;;  %v2048_v4 = vld [vmem:[%s2951_s7 + $0x50] sm:$0xff] }
 0xd77   :  { %v1619_v1 = vpop.permute.xlu0 %1618 }
 0xd78   :  { %v1628_v3 = vsel %vm791_vm10, %v1626_v0, %v1619_v1  ;;  %v2051_v0 = vld [vmem:[%s2951_s7 + $0x68] sm:$0xff]  ;;  %v2050_v1 = vld [vmem:[%s2951_s7 + $0x60] sm:$0xff] }
 0xd79   :  { %2037 = vmatmul.msk.f32.vlgmr.msra.gmra.mxu0 %vm124_vm0, %v1628_v3  ;;  %1802 = vmatpush.msrb.mxu1 %v2051_v0  ;;  %v2049_v3 = vld [vmem:[%s2951_s7 + $0x58] sm:$0xff] }
 0xd7b   :  { %1803 = vmatpush.msrb.mxu1 %v2050_v1  ;;  %v1864_v1 = vperm.slane %v2854_v11, 5 }
 0xd7d   :  { %1804 = vmatpush.msrb.mxu1 %v2049_v3 }
 0xd7f   :  { %v1613_v5 = vpop.permute.xlu0 %1612  ;;  %1805 = vmatpush.msrb.mxu1 %v2048_v4 }
 0xd80   :  { %v1627_v7 = vsel %vm788_vm9, %v1625_v6, %v1613_v5  ;;  %v2047_v5 = vld [vmem:[%s2951_s7 + $0x48] sm:$0xff]  ;;  %v2046_v6 = vld [vmem:[%s2951_s7 + $0x40] sm:$0xff] }
 0xd81   :  { %1806 = vmatpush.msrb.mxu1 %v2047_v5 }
 0xd83   :  { %1807 = vmatpush.msrb.mxu1 %v2046_v6 }
 0xd85   :  { %v1621_v8 = vpop.permute.xlu1 %1620 }
 0xd86   :  { %v1629_v9 = vsel %vm791_vm10, %v1627_v7, %v1621_v8  ;;  %v2112_v7 = vld [vmem:[%s2953_s9 + $0x1] ss:$0 sm:$0xff] }
 0xd87   :  { %2038 = vmatmul.msk.f32.gmra.mxu0 %vm124_vm0, %v1629_v9 }
 0xdf6   :  { %v1661_v13 = vpop.f32.mrf.mxu0 }
 0xdf7   :  { %v1662_v14 = vadd.f32 %v1661_v13, %v1637_v12 }
 0xdf9   :  { %v1667_v15 = vadd.f32 %v1662_v14, %v2726_v34 }
 0xdfb   :  { %v1669_v16 = vsel %vm124_vm0, %v1667_v15, 0.0 }
 0xdfc   :  { %1670 = vadd.xlane.f32.xlu0 %v1669_v16 }
 0xe04   :  { %v1664_v17 = vpop.f32.mrf.mxu0 }
 0xe05   :  { %v1665_v18 = vadd.f32 %v1664_v17, %v1637_v12 }
 0xe07   :  { %v1668_v19 = vadd.f32 %v1665_v18, %v2730_v39  ;;  %v2042_v39 = vld [vmem:[%s2950_s6 + $0x38] sm:$0xff]  ;;  %s2383_s6 = smov [#allocation11]  }
 0xe08   :  { %1747 = vmatpush.msra.mxu3 %v2042_v39  ;;  %s1956_s19 = sshll.u32 %s2383_s6, 4  ;;  %s1957_s19 = int_to_ptr.vmem [resolvable:$true] %s1956_s19 }
 0xe09   :  { %v1672_v20 = vsel %vm124_vm0, %v1668_v19, 0.0 }
 0xe0a   :  { %1673 = vadd.xlane.f32.xlu1 %v1672_v20  ;;  %1748 = vmatpush.msra.mxu3 %v2041_v30  ;;  %v1785_v30 = vperm.slane %v2854_v11, 3  ;;  %v1868_v11 = vld [vmem:[#allocation7 + $0x1] sm:$0x1] }
 0xe0c   :  { %1749 = vmatpush.msra.mxu3 %v2040_v61 }
 0xe0e   :  { %1750 = vmatpush.msra.mxu3 %v2039_v31 }
 0xe6f   :  { %v1671_v21 = vpop.xlane.xlu0 %1670 }
 0xe70   :  { %v1675_v22 = vmul.f32 %v1671_v21, %v2481_v10 }
 0xe72   :  { %v1677_v23 = vsub.f32 %v1667_v15, %v1675_v22 }
 0xe74   :  { %v1679_v24 = vmul.f32 %v1677_v23, %v1677_v23 }
 0xe76   :  { %v1681_v25 = vsel %vm124_vm0, %v1679_v24, 0.0 }
 0xe77   :  { %1682 = vadd.xlane.f32.xlu2 %v1681_v25 }
 0xe7d   :  { %v1674_v26 = vpop.xlane.xlu1 %1673 }
 0xe7e   :  { %v1676_v34 = vmul.f32 %v1674_v26, %v2481_v10 }
 0xe80   :  { %v1678_v27 = vsub.f32 %v1668_v19, %v1676_v34 }
 0xe82   :  { %v1680_v28 = vmul.f32 %v1678_v27, %v1678_v27 }
 0xe84   :  { %v1684_v29 = vsel %vm124_vm0, %v1680_v28, 0.0 }
 0xe85   :  { %1685 = vadd.xlane.f32.xlu0 %v1684_v29 }
 0xeea   :  { %v1683_v47 = vpop.xlane.xlu2 %1682 }
 0xeeb   :  { %v1687_v32 = vmul.f32 %v1683_v47, %v2481_v10 }
 0xeed   :  { %v1689_v33 = vadd.f32 1e-12, %v1687_v32 }
 0xeef   :  { %2196 = vrsqrt.f32 %v1689_v33  ;;  %vm1697_vm10 = vweird.f32 %v1689_v33 }
 0xef5   :  { %v2197_v35 = vpop.eup %2196 }
 0xef6   :  { %v1692_v36 = vmul.f32 %v2197_v35, %v1689_v33  ;;  %vm1698_vm9 = vweird.f32 %v2197_v35 }
 0xef7   :  { %vm1699_vm12 = vmor %vm1697_vm10, %vm1698_vm9 }
 0xef8   :  { %v1693_v2 = vmul.f32 %v2197_v35, %v1692_v36  ;;  %v1686_v37 = vpop.xlane.xlu0 %1685 }
 0xef9   :  { %v1688_v38 = vmul.f32 %v1686_v37, %v2481_v10 }
 0xefa   :  { %v1694_v42 = vmul.f32 0.5, %v1693_v2 }
 0xefb   :  { %v1690_v40 = vadd.f32 1e-12, %v1688_v38 }
 0xefc   :  { %v1695_v41 = vsub.f32 1.5, %v1694_v42 }
 0xefd   :  { %2198 = vrsqrt.f32 %v1690_v40  ;;  %vm1707_vm14 = vweird.f32 %v1690_v40 }
 0xefe   :  { %v1696_v48 = vmul.f32 %v2197_v35, %v1695_v41 }
 0xf00   :  { %v1700_v44 = vsel %vm1699_vm12, %v2197_v35, %v1696_v48 }
 0xf01   :  { %v1711_v45 = vmul.f32 %v1700_v44, %v1677_v23 }
 0xf03   :  { %v2199_v46 = vpop.eup %2198  ;;  %v1714_v49 = vmul.f32 %v1713_v43, %v1711_v45 }
 0xf04   :  { %v1702_v50 = vmul.f32 %v2199_v46, %v1690_v40  ;;  %vm1708_vm13 = vweird.f32 %v2199_v46 }
 0xf05   :  { %v1717_v51 = vadd.f32 %v1716_v53, %v1714_v49  ;;  %vm1709_vm15 = vmor %vm1707_vm14, %vm1708_vm13 }
 0xf06   :  { %v1703_v52 = vmul.f32 %v2199_v46, %v1702_v50 }
 0xf07   :  { %2044 = vmatmul.msk.f32.vlgmr.msra.gmra.mxu3 %vm124_vm0, %v1717_v51 }
 0xf08   :  { %v1704_v56 = vmul.f32 0.5, %v1703_v52 }
 0xf0a   :  { %v1705_v54 = vsub.f32 1.5, %v1704_v56 }
 0xf0c   :  { %v1706_v55 = vmul.f32 %v2199_v46, %v1705_v54 }
 0xf0e   :  { %v1710_v58 = vsel %vm1709_vm15, %v2199_v46, %v1706_v55 }
 0xf0f   :  { %v1712_v57 = vmul.f32 %v1710_v58, %v1678_v27 }
 0xf11   :  { %v1715_v59 = vmul.f32 %v1713_v43, %v1712_v57 }
 0xf13   :  { %v1718_v60 = vadd.f32 %v1716_v53, %v1715_v59 }
 0xf15   :  { %2045 = vmatmul.msk.f32.gmra.mxu3 %vm124_vm0, %v1718_v60 }
 0xf8a   :  { %v1752_v8 = vpop.f32.mrf.mxu3 }
 0xf8b   :  { %v1753_v9 = vadd.f32 %v2112_v7, %v1752_v8 }
 0xf8d   :  { %v1758_v12 = vmul.f32 %v1753_v9, %v1753_v9 }
 0xf8f   :  { %v1760_v13 = vmul.f32 %v1758_v12, %v1753_v9 }
 0xf91   :  { %v1762_v14 = vmul.f32 0.044715, %v1760_v13 }
 0xf93   :  { %v1764_v15 = vadd.f32 %v1762_v14, %v1753_v9 }
 0xf95   :  { %v1766_v16 = vmul.f32 0.7978846, %v1764_v15 }
 0xf97   :  { %2200 = vtanh.f32 %v1766_v16 }
 0xf98   :  { %v1755_v17 = vpop.f32.mrf.mxu3 }
 0xf99   :  { %v1756_v18 = vadd.f32 %v2112_v7, %v1755_v17  ;;  %v1867_v7 = vld [vmem:[#allocation7] sm:$0x1]  ;;  %v1918_v17 = vld [vmem:[%s2955_s11 + $0x18] sm:$0xff] }
 0xf9a   :  { %1942 = vmatpush.msrb.mxu0 %v1918_v17 }
 0xf9b   :  { %v1759_v19 = vmul.f32 %v1756_v18, %v1756_v18 }
 0xf9d   :  { %v2201_v20 = vpop.eup %2200  ;;  %v1761_v21 = vmul.f32 %v1759_v19, %v1756_v18  ;;  %v1916_v19 = vld [vmem:[%s2955_s11 + $0x8] sm:$0xff] }
 0xf9e   :  { %v1770_v22 = vadd.f32 1.0, %v2201_v20  ;;  %v1915_v20 = vld [vmem:[%s2955_s11] sm:$0xff] }
 0xf9f   :  { %v1763_v23 = vmul.f32 0.044715, %v1761_v21 }
 0xfa0   :  { %v1772_v24 = vmul.f32 0.5, %v1770_v22 }
 0xfa1   :  { %v1765_v25 = vadd.f32 %v1763_v23, %v1756_v18 }
 0xfa2   :  { %v1774_v26 = vmul.f32 %v1772_v24, %v1753_v9 }
 0xfa3   :  { %v1767_v34 = vmul.f32 0.7978846, %v1765_v25  ;;  %v2113_v25 = vld [vmem:[%s2956_s12] ss:$0 sm:$0xff] }
 0xfa4   :  { %2054 = vmatmul.msk.f32.vlgmr.msrb.gmra.mxu1 %vm945_vm2, %v1774_v26 }
 0xfa5   :  { %2202 = vtanh.f32 %v1767_v34 }
 0xfab   :  { %v2203_v27 = vpop.eup %2202 }
 0xfac   :  { %v1771_v28 = vadd.f32 1.0, %v2203_v27 }
 0xfae   :  { %v1773_v29 = vmul.f32 0.5, %v1771_v28 }
 0xfb0   :  { %v1775_v39 = vmul.f32 %v1773_v29, %v1756_v18  ;;  %v1917_v18 = vld [vmem:[%s2955_s11 + $0x10] sm:$0xff] }
 0xfb1   :  { %1943 = vmatpush.msrb.mxu0 %v1917_v18 }
 0xfb2   :  { %2055 = vmatmul.msk.f32.gmra.mxu1 %vm945_vm2, %v1775_v39 }
 0xfb3   :  { %1944 = vmatpush.msrb.mxu0 %v1916_v19 }
 0xfb5   :  { %1945 = vmatpush.msrb.mxu0 %v1915_v20 }
0x1021   :  { %v1809_v61 = vpop.f32.mrf.mxu1 }
0x1022   :  { %v1810_v31 = vadd.f32 %v1809_v61, %v1785_v30 }
0x1024   :  { %v1815_v47 = vadd.f32 %v1810_v31, %v1717_v51 }
0x1026   :  { %v1817_v32 = vsel %vm124_vm0, %v1815_v47, 0.0 }
0x1027   :  { %1818 = vadd.xlane.f32.xlu1 %v1817_v32 }
0x102f   :  { %v1812_v33 = vpop.f32.mrf.mxu1 }
0x1030   :  { %v1813_v35 = vadd.f32 %v1812_v33, %v1785_v30 }
0x1032   :  { %v1816_v36 = vadd.f32 %v1813_v35, %v1718_v60 }
0x1034   :  { %v1820_v2 = vsel %vm124_vm0, %v1816_v36, 0.0 }
0x1035   :  { %1821 = vadd.xlane.f32.xlu2 %v1820_v2 }
0x109a   :  { %v1819_v37 = vpop.xlane.xlu1 %1818 }
0x109b   :  { %v1823_v38 = vmul.f32 %v1819_v37, %v2481_v10 }
0x109d   :  { %v1825_v42 = vsub.f32 %v1815_v47, %v1823_v38 }
0x109f   :  { %v1827_v40 = vmul.f32 %v1825_v42, %v1825_v42 }
0x10a1   :  { %v1829_v41 = vsel %vm124_vm0, %v1827_v40, 0.0 }
0x10a2   :  { %1830 = vadd.xlane.f32.xlu0 %v1829_v41 }
0x10a8   :  { %v1822_v48 = vpop.xlane.xlu2 %1821 }
0x10a9   :  { %v1824_v43 = vmul.f32 %v1822_v48, %v2481_v10 }
0x10ab   :  { %v1826_v44 = vsub.f32 %v1816_v36, %v1824_v43 }
0x10ad   :  { %v1828_v45 = vmul.f32 %v1826_v44, %v1826_v44 }
0x10af   :  { %v1832_v53 = vsel %vm124_vm0, %v1828_v45, 0.0 }
0x10b0   :  { %1833 = vadd.xlane.f32.xlu1 %v1832_v53 }
0x1115   :  { %v1831_v46 = vpop.xlane.xlu0 %1830 }
0x1116   :  { %v1835_v49 = vmul.f32 %v1831_v46, %v2481_v10 }
0x1118   :  { %v1837_v50 = vadd.f32 1e-12, %v1835_v49 }
0x111a   :  { %2204 = vrsqrt.f32 %v1837_v50  ;;  %vm1845_vm2 = vweird.f32 %v1837_v50 }
0x1120   :  { %v2205_v51 = vpop.eup %2204 }
0x1121   :  { %v1840_v52 = vmul.f32 %v2205_v51, %v1837_v50  ;;  %vm1846_vm1 = vweird.f32 %v2205_v51 }
0x1122   :  { %vm1847_vm3 = vmor %vm1845_vm2, %vm1846_vm1 }
0x1123   :  { %v1841_v56 = vmul.f32 %v2205_v51, %v1840_v52  ;;  %v1834_v54 = vpop.xlane.xlu1 %1833 }
0x1124   :  { %v1836_v55 = vmul.f32 %v1834_v54, %v2481_v10 }
0x1125   :  { %v1842_v58 = vmul.f32 0.5, %v1841_v56 }
0x1126   :  { %v1838_v57 = vadd.f32 1e-12, %v1836_v55 }
0x1127   :  { %v1843_v59 = vsub.f32 1.5, %v1842_v58 }
0x1128   :  { %2206 = vrsqrt.f32 %v1838_v57  ;;  %vm1855_vm5 = vweird.f32 %v1838_v57 }
0x1129   :  { %v1844_v60 = vmul.f32 %v2205_v51, %v1843_v59 }
0x112b   :  { %v1848_v63 = vsel %vm1847_vm3, %v2205_v51, %v1844_v60 }
0x112c   :  { %v1859_v0 = vmul.f32 %v1848_v63, %v1825_v42 }
0x112e   :  { %v2207_v3 = vpop.eup %2206  ;;  %v1862_v4 = vmul.f32 %v1861_v62, %v1859_v0 }
0x112f   :  { %v1850_v5 = vmul.f32 %v2207_v3, %v1838_v57  ;;  %vm1856_vm4 = vweird.f32 %v2207_v3 }
0x1130   :  { %v1865_v6 = vadd.f32 %v1864_v1, %v1862_v4  ;;  %vm1857_vm6 = vmor %vm1855_vm5, %vm1856_vm4 }
0x1131   :  { %v1851_v10 = vmul.f32 %v2207_v3, %v1850_v5 }
0x1132   :  { %1887 = vmatpush.msra.mxu2 %v1865_v6 }
0x1133   :  { %v1852_v8 = vmul.f32 0.5, %v1851_v10  ;;  %2056 = vmatmul.msk.f32.vlgmr.msra.gmra.mxu2 %vm224_vm8, %v1867_v7 }
0x1135   :  { %v1853_v9 = vsub.f32 1.5, %v1852_v8 }
0x1137   :  { %v1854_v12 = vmul.f32 %v2207_v3, %v1853_v9 }
0x1139   :  { %v1858_v13 = vsel %vm1857_vm6, %v2207_v3, %v1854_v12 }
0x113a   :  { %v1860_v14 = vmul.f32 %v1858_v13, %v1826_v44 }
0x113c   :  { %v1863_v15 = vmul.f32 %v1861_v62, %v1860_v14 }
0x113e   :  { %v1866_v16 = vadd.f32 %v1864_v1, %v1863_v15 }
0x1140   :  { %1910 = vmatpush.msrb.mxu2 %v1866_v16 }
0x1141   :  { %2057 = vmatmul.msk.f32.vlgmr.msrb.gmra.mxu2 %vm224_vm8, %v1868_v11  ;;  %vm1926_vm8 = vcmask 1041409  }
0x11b6   :  { %v1889_v21 = vpop.f32.mrf.mxu2 }
0x11c4   :  { %v1912_v22 = vpop.f32.mrf.mxu2 }
0x11c5   :  { %v1925_v23 = vrot.slane %v1912_v22, 7 }
0x11c7   :  { %v1927_v24 = vsel %vm1926_vm8, %v1925_v23, %v1889_v21 }
0x11c8   :  { %2058 = vmatmul.msk.f32.vlgmr.msrb.gmra.mxu0 %vm124_vm0, %v1927_v24 }
0x1245   :  { %v1947_v26 = vpop.f32.mrf.mxu0 }
0x1246   :  { %v1948_v34 = vadd.f32 %v2113_v25, %v1947_v26 }
0x1248   :  { %1950 = vst [vmem:[#allocation11] sm:$0x3] %v1948_v34 }
0x1249   :  { %1961 = dma.vmem_to_hbm [thread:$0]  %s1957_s19, 32, %s1959_s21, [#allocation4]  }
0x124a   :  { %2359 = dma.done.wait [#allocation4], 32  }
0x124b   :  { %2360 = vsyncadd [#allocation4], 4294967264 }
0x124c   :  { %1966 = vsyncpa [#allocation3], 1 }
0x124d   :  { %1967 = vsyncpa [#allocation6], 1 }
0x124e   :  { %1968 = vsyncpa [#allocation9], 1 }
0x124f   :  { %1969 = vsyncpa [#allocation4], 1 }

</bundles_post_ra>
